<compile_context>
chip_gen: v7x
topology: tpu7x:2x2x1
jax: 0.10.0
libtpu: 0.0.40
codegen_flags: <defaults>
</compile_context>

<pallas_src>
import functools

import jax
import jax.numpy as jnp
import numpy as np
from jax.experimental import pallas as pl
from jax.experimental.pallas import tpu as pltpu


def _round_up(x, m):
    return ((x + m - 1) // m) * m


def _vmem_cap_bytes():
    # Generation-aware VMEM cap: 64 MiB is physically valid on v5e/v6e/v7x.
    try:
        cap = int(pltpu.get_tpu_info().vmem_capacity_bytes)
        return min(cap, 128 << 20)
    except Exception:
        return 64 << 20


# ---------------------------------------------------------------------------
# Fused kernel (single H0 tile): h1 accumulated in f32 VMEM over the K grid;
# last-K epilogue applies bias+ReLU and the tiny layers 2+3 in place.
# ---------------------------------------------------------------------------
def fused_kernel(x_ref, w1_ref, b1_ref, w2_ref, b2_ref, w3_ref, b3_ref,
                 out_ref, h1_acc):
    k = pl.program_id(0)

    @pl.when(k == 0)
    def _():
        h1_acc[...] = jnp.zeros_like(h1_acc)

    # bf16 x bf16 -> f32 accumulate (MXU-native input width on all generations).
    h1_acc[...] += jnp.dot(x_ref[...].astype(jnp.bfloat16), w1_ref[...],
                           preferred_element_type=jnp.float32)

    @pl.when(k == pl.num_programs(0) - 1)
    def _():
        h1 = jnp.maximum(h1_acc[...] + b1_ref[...], 0.0)
        h2 = jnp.maximum(
            jnp.dot(h1, w2_ref[...], preferred_element_type=jnp.float32)
            + b2_ref[...], 0.0)
        out = jnp.dot(h2, w3_ref[...], preferred_element_type=jnp.float32)
        out_ref[...] = (out + b3_ref[...]).astype(out_ref.dtype)


# ---------------------------------------------------------------------------
# Split-H0 layer-1 kernel (v7x megacore path): grid = (n_h0 "parallel",
# n_k "arbitrary").  Accumulates directly into the k-invariant output block.
# ---------------------------------------------------------------------------
def l1_kernel(x_ref, w1_ref, b1_ref, h1_ref):
    k = pl.program_id(1)

    @pl.when(k == 0)
    def _():
        h1_ref[...] = jnp.zeros_like(h1_ref)

    h1_ref[...] += jnp.dot(x_ref[...].astype(jnp.bfloat16), w1_ref[...],
                           preferred_element_type=jnp.float32)

    @pl.when(k == pl.num_programs(1) - 1)
    def _():
        h1_ref[...] = jnp.maximum(h1_ref[...] + b1_ref[...], 0.0)


# ---------------------------------------------------------------------------
# One-time weight preparation (call at load time, NOT per forward pass).
# ---------------------------------------------------------------------------
def prepare_weights(w1, b1, w2, b2, w3, b3, *, tk=4096, n_h0=1):
    """Pad to tile-friendly shapes, cast the heavy w1 stream to bf16 once, and
    (for n_h0 > 1, v7x megacore) re-layout w1 to (n_h0, Kp, th0) so each
    TensorCore's w1 stream is fully contiguous.  Zero-padding is exact for
    matmul + ReLU."""
    K, H0 = w1.shape
    H1 = w2.shape[1]
    C = w3.shape[1]

    tk = max(256, (tk // 256) * 256)
    tk = min(tk, _round_up(K, 256))
    Kp = _round_up(K, tk)

    H0p = _round_up(H0, 128 * n_h0)
    th0 = H0p // n_h0
    H1p = _round_up(H1, 128)

    w1p = jnp.pad(w1, ((0, Kp - K), (0, H0p - H0))).astype(jnp.bfloat16)
    if n_h0 > 1:
        # (Kp, H0p) -> (n_h0, Kp, th0): contiguous per-H0-tile stream.
        w1p = jnp.transpose(w1p.reshape(Kp, n_h0, th0), (1, 0, 2))
    b1p = jnp.pad(b1, ((0, 0), (0, H0p - H0)))
    w2p = jnp.pad(w2, ((0, H0p - H0), (0, H1p - H1)))
    b2p = jnp.pad(b2, ((0, 0), (0, H1p - H1)))
    w3p = jnp.pad(w3, ((0, H1p - H1), (0, 0)))
    b3p = b3                     # classes dim is never padded

    params = tuple(jax.device_put(p) for p in (w1p, b1p, w2p, b2p, w3p, b3p))
    meta = dict(K=K, Kp=Kp, tk=tk, H0p=H0p, th0=th0, n_h0=n_h0, H1p=H1p, C=C)
    return params, meta


# ---------------------------------------------------------------------------
# Forward pass.
# ---------------------------------------------------------------------------
def palatalization_classifier(x, params, meta):
    w1p, b1p, w2p, b2p, w3p, b3p = params
    B = x.shape[0]
    K, Kp, tk = meta["K"], meta["Kp"], meta["tk"]
    H0p, th0, n_h0 = meta["H0p"], meta["th0"], meta["n_h0"]
    H1p, C = meta["H1p"], meta["C"]
    n_k = Kp // tk

    # Only the tiny activation is padded per call (w1 prep is done once above).
    xp = jnp.pad(x, ((0, 0), (0, Kp - K)))

    # VMEM budget: streamed x + double-buffered bf16 w1 tile + small residents.
    est = (2 * B * tk * 4 + 2 * tk * th0 * 2 + B * H0p * 4
           + H0p * 4 + H0p * H1p * 4 + H1p * 4 + H1p * C * 4 + B * th0 * 4)
    vmem_limit = min(max(int(est * 1.5) + (4 << 20), 16 << 20), _vmem_cap_bytes())

    cost = pl.CostEstimate(
        flops=2 * B * Kp * H0p,
        transcendentals=0,
        bytes_accessed=int(2 * Kp * H0p + 4 * B * Kp + 4 * B * H0p))

    if n_h0 == 1:
        # Single-TC path (v5e / v6e): fully fused, one kernel launch.
        return pl.pallas_call(
            fused_kernel,
            out_shape=jax.ShapeDtypeStruct((B, C), jnp.float32),
            grid_spec=pltpu.PrefetchScalarGridSpec(
                num_scalar_prefetch=0,
                grid=(n_k,),
                in_specs=[
                    pl.BlockSpec((B, tk), lambda k: (0, k)),      # x stream
                    pl.BlockSpec((tk, H0p), lambda k: (k, 0)),    # bf16 w1 stream
                    pl.BlockSpec((1, H0p), lambda k: (0, 0)),     # b1 resident
                    pl.BlockSpec((H0p, H1p), lambda k: (0, 0)),   # w2 resident
                    pl.BlockSpec((1, H1p), lambda k: (0, 0)),     # b2 resident
                    pl.BlockSpec((H1p, C), lambda k: (0, 0)),     # w3 resident
                    pl.BlockSpec((1, C), lambda k: (0, 0)),       # b3 resident
                ],
                out_specs=pl.BlockSpec((B, C), lambda k: (0, 0)),
                scratch_shapes=[pltpu.VMEM((B, H0p), jnp.float32)],
            ),
            compiler_params=pltpu.CompilerParams(
                dimension_semantics=("arbitrary",),
                vmem_limit_bytes=vmem_limit),
            cost_estimate=cost,
        )(xp, w1p, b1p, w2p, b2p, w3p, b3p)

    # Megacore path (v7x): parallel H0 split for layer 1, tiny head in plain XLA.
    h1 = pl.pallas_call(
        l1_kernel,
        out_shape=jax.ShapeDtypeStruct((B, H0p), jnp.float32),
        grid_spec=pltpu.PrefetchScalarGridSpec(
            num_scalar_prefetch=0,
            grid=(n_h0, n_k),
            in_specs=[
                pl.BlockSpec((B, tk), lambda j, k: (0, k)),           # x stream
                pl.BlockSpec((None, tk, th0), lambda j, k: (j, k, 0)),# contiguous w1
                pl.BlockSpec((1, th0), lambda j, k: (0, j)),          # b1 tile
            ],
            out_specs=pl.BlockSpec((B, th0), lambda j, k: (0, j)),
        ),
        compiler_params=pltpu.CompilerParams(
            dimension_semantics=("parallel", "arbitrary"),
            vmem_limit_bytes=vmem_limit),
        cost_estimate=cost,
    )(xp, w1p, b1p)

    h2 = jnp.maximum(h1 @ w2p + b2p, 0.0)
    return h2 @ w3p + b3p


if __name__ == "__main__":
    # Small stand-in shapes for (batch=8, input_size=201076, 512, 100, 2).
    # K deliberately NOT a multiple of 128/256 to exercise the padding path.
    B, K, H0, H1, C = 8, 1000, 512, 100, 2

    key = jax.random.PRNGKey(0)
    k_x, k_w1, k_b1, k_w2, k_b2, k_w3, k_b3 = jax.random.split(key, 7)

    x = jax.random.normal(k_x, (B, K), dtype=jnp.float32)
    # Deterministic, PyTorch-Linear-like scaled init ((in, out) layout).
    w1 = jax.random.uniform(k_w1, (K, H0), jnp.float32, -1.0, 1.0) / np.sqrt(K)
    b1 = jax.random.uniform(k_b1, (1, H0), jnp.float32, -1.0, 1.0) / np.sqrt(K)
    w2 = jax.random.uniform(k_w2, (H0, H1), jnp.float32, -1.0, 1.0) / np.sqrt(H0)
    b2 = jax.random.uniform(k_b2, (1, H1), jnp.float32, -1.0, 1.0) / np.sqrt(H0)
    w3 = jax.random.uniform(k_w3, (H1, C), jnp.float32, -1.0, 1.0) / np.sqrt(H1)
    b3 = jax.random.uniform(k_b3, (1, C), jnp.float32, -1.0, 1.0) / np.sqrt(H1)

    def reference_f32(x, w1, b1, w2, b2, w3, b3):
        h1 = jnp.maximum(x @ w1 + b1, 0.0)
        h2 = jnp.maximum(h1 @ w2 + b2, 0.0)
        return h2 @ w3 + b3

    def reference_bf16_l1(x, w1, b1, w2, b2, w3, b3):
        h1 = jnp.dot(x.astype(jnp.bfloat16), w1.astype(jnp.bfloat16),
                     preferred_element_type=jnp.float32)
        h1 = jnp.maximum(h1 + b1, 0.0)
        h2 = jnp.maximum(h1 @ w2 + b2, 0.0)
        return h2 @ w3 + b3

    ref_f32 = jax.block_until_ready(reference_f32(x, w1, b1, w2, b2, w3, b3))
    ref_b16 = jax.block_until_ready(reference_bf16_l1(x, w1, b1, w2, b2, w3, b3))

    # Default (v5e / v6e) config: single full-width H0 tile, fused head.
    params1, meta1 = prepare_weights(w1, b1, w2, b2, w3, b3, tk=4096, n_h0=1)
    out1 = jax.block_until_ready(palatalization_classifier(x, params1, meta1))

    # v7x-style megacore config: 2-way parallel H0 split, contiguous w1 layout.
    params2, meta2 = prepare_weights(w1, b1, w2, b2, w3, b3, tk=4096, n_h0=2)
    out2 = jax.block_until_ready(palatalization_classifier(x, params2, meta2))

    for out in (out1, out2):
        # Tight match against the same bf16-w1-stream math.
        np.testing.assert_allclose(np.asarray(out), np.asarray(ref_b16),
                                   rtol=5e-3, atol=5e-3)
        # Loose match against the pure-f32 reference (bf16 w1 stream).
        np.testing.assert_allclose(np.asarray(out), np.asarray(ref_f32),
                                   rtol=2e-2, atol=2e-2)

    print("KERNEL_OK")
</pallas_src>

<mosaic_0001>
module attributes {stable_mosaic.version = 11 : i64} {
  func.func @fused_kernel(%arg0: i32, %arg1: memref<8x1024xf32, #tpu.memory_space<vmem>>, %arg2: memref<1024x512xbf16, #tpu.memory_space<vmem>>, %arg3: memref<1x512xf32, #tpu.memory_space<vmem>>, %arg4: memref<512x128xf32, #tpu.memory_space<vmem>>, %arg5: memref<1x128xf32, #tpu.memory_space<vmem>>, %arg6: memref<128x2xf32, #tpu.memory_space<vmem>>, %arg7: memref<1x2xf32, #tpu.memory_space<vmem>>, %arg8: memref<8x2xf32, #tpu.memory_space<vmem>>, %arg9: memref<8x512xf32, #tpu.memory_space<vmem>>) attributes {dimension_semantics = [#tpu.dimension_semantics<arbitrary>], iteration_bounds = array<i64: 1>, scalar_prefetch = 0 : i64, scratch_operands = 1 : i64, tpu.core_type = #tpu.core_type<tc>, window_params = [{transform_indices = @transform_0, window_bounds = array<i64: 8, 1024>}, {transform_indices = @transform_1, window_bounds = array<i64: 1024, 512>}, {pipeline_mode = #tpu.pipeline_mode<synchronous>, transform_indices = @transform_2, window_bounds = array<i64: 1, 512>}, {pipeline_mode = #tpu.pipeline_mode<synchronous>, transform_indices = @transform_3, window_bounds = array<i64: 512, 128>}, {pipeline_mode = #tpu.pipeline_mode<synchronous>, transform_indices = @transform_4, window_bounds = array<i64: 1, 128>}, {pipeline_mode = #tpu.pipeline_mode<synchronous>, transform_indices = @transform_5, window_bounds = array<i64: 128, 2>}, {pipeline_mode = #tpu.pipeline_mode<synchronous>, transform_indices = @transform_6, window_bounds = array<i64: 1, 2>}, {pipeline_mode = #tpu.pipeline_mode<synchronous>, transform_indices = @transform_7, window_bounds = array<i64: 8, 2>}]} {
    %c0_i32 = arith.constant 0 : i32
    %0 = arith.cmpi eq, %arg0, %c0_i32 : i32
    %1 = arith.extui %0 : i1 to i32
    %c0_i32_0 = arith.constant 0 : i32
    %2 = arith.cmpi ne, %1, %c0_i32_0 : i32
    scf.if %2 {
      %cst_10 = arith.constant 0.000000e+00 : f32
      %13 = vector.broadcast %cst_10 : f32 to vector<8x512xf32>
      %c0_11 = arith.constant 0 : index
      %c0_12 = arith.constant 0 : index
      %14 = vector.load %arg9[%c0_11, %c0_12] : memref<8x512xf32, #tpu.memory_space<vmem>>, vector<8x512xf32>
      tpu.vector_store %arg9[%c0_11, %c0_12], %13 {strides = array<i32>} : memref<8x512xf32, #tpu.memory_space<vmem>>, vector<8x512xf32>,
    } else {
    }
    %c0 = arith.constant 0 : index
    %c0_1 = arith.constant 0 : index
    %3 = vector.load %arg9[%c0, %c0_1] : memref<8x512xf32, #tpu.memory_space<vmem>>, vector<8x512xf32>
    %c0_2 = arith.constant 0 : index
    %c0_3 = arith.constant 0 : index
    %4 = vector.load %arg1[%c0_2, %c0_3] : memref<8x1024xf32, #tpu.memory_space<vmem>>, vector<8x1024xf32>
    %5 = arith.truncf %4 : vector<8x1024xf32> to vector<8x1024xbf16>
    %c0_4 = arith.constant 0 : index
    %c0_5 = arith.constant 0 : index
    %6 = vector.load %arg2[%c0_4, %c0_5] : memref<1024x512xbf16, #tpu.memory_space<vmem>>, vector<1024x512xbf16>
    %cst = arith.constant dense<0.000000e+00> : vector<8x512xf32>
    %7 = tpu.matmul %5, %6, %cst {dimension_numbers = #tpu.dot_dimension_numbers<[1], [0], [0], [1], [0, 0, 1, 1], [], []>} : vector<8x1024xbf16>, vector<1024x512xbf16>, vector<8x512xf32> -> vector<8x512xf32>
    %8 = arith.addf %3, %7 : vector<8x512xf32>
    %c0_6 = arith.constant 0 : index
    %c0_7 = arith.constant 0 : index
    %9 = vector.load %arg9[%c0_6, %c0_7] : memref<8x512xf32, #tpu.memory_space<vmem>>, vector<8x512xf32>
    tpu.vector_store %arg9[%c0_6, %c0_7], %8 {strides = array<i32>} : memref<8x512xf32, #tpu.memory_space<vmem>>, vector<8x512xf32>,
    %c0_i32_8 = arith.constant 0 : i32
    %10 = arith.cmpi eq, %arg0, %c0_i32_8 : i32
    %11 = arith.extui %10 : i1 to i32
    %c0_i32_9 = arith.constant 0 : i32
    %12 = arith.cmpi ne, %11, %c0_i32_9 : i32
    scf.if %12 {
      %c0_10 = arith.constant 0 : index
      %c0_11 = arith.constant 0 : index
      %13 = vector.load %arg9[%c0_10, %c0_11] : memref<8x512xf32, #tpu.memory_space<vmem>>, vector<8x512xf32>
      %c0_12 = arith.constant 0 : index
      %c0_13 = arith.constant 0 : index
      %14 = vector.load %arg3[%c0_12, %c0_13] : memref<1x512xf32, #tpu.memory_space<vmem>>, vector<1x512xf32>
      %15 = vector.broadcast %14 : vector<1x512xf32> to vector<8x512xf32>
      %16 = arith.addf %13, %15 : vector<8x512xf32>
      %cst_14 = arith.constant 0.000000e+00 : f32
      %17 = vector.broadcast %cst_14 : f32 to vector<8x512xf32>
      %18 = arith.maximumf %16, %17 : vector<8x512xf32>
      %c0_15 = arith.constant 0 : index
      %c0_16 = arith.constant 0 : index
      %19 = vector.load %arg4[%c0_15, %c0_16] : memref<512x128xf32, #tpu.memory_space<vmem>>, vector<512x128xf32>
      %cst_17 = arith.constant dense<0.000000e+00> : vector<8x128xf32>
      %20 = tpu.matmul %18, %19, %cst_17 {dimension_numbers = #tpu.dot_dimension_numbers<[1], [0], [0], [1], [0, 0, 1, 1], [], []>} : vector<8x512xf32>, vector<512x128xf32>, vector<8x128xf32> -> vector<8x128xf32>
      %c0_18 = arith.constant 0 : index
      %c0_19 = arith.constant 0 : index
      %21 = vector.load %arg5[%c0_18, %c0_19] : memref<1x128xf32, #tpu.memory_space<vmem>>, vector<1x128xf32>
      %22 = vector.broadcast %21 : vector<1x128xf32> to vector<8x128xf32>
      %23 = arith.addf %20, %22 : vector<8x128xf32>
      %cst_20 = arith.constant 0.000000e+00 : f32
      %24 = vector.broadcast %cst_20 : f32 to vector<8x128xf32>
      %25 = arith.maximumf %23, %24 : vector<8x128xf32>
      %c0_21 = arith.constant 0 : index
      %c0_22 = arith.constant 0 : index
      %26 = vector.load %arg6[%c0_21, %c0_22] : memref<128x2xf32, #tpu.memory_space<vmem>>, vector<128x2xf32>
      %cst_23 = arith.constant dense<0.000000e+00> : vector<8x2xf32>
      %27 = tpu.matmul %25, %26, %cst_23 {dimension_numbers = #tpu.dot_dimension_numbers<[1], [0], [0], [1], [0, 0, 1, 1], [], []>} : vector<8x128xf32>, vector<128x2xf32>, vector<8x2xf32> -> vector<8x2xf32>
      %c0_24 = arith.constant 0 : index
      %c0_25 = arith.constant 0 : index
      %28 = vector.load %arg7[%c0_24, %c0_25] : memref<1x2xf32, #tpu.memory_space<vmem>>, vector<1x2xf32>
      %29 = vector.broadcast %28 : vector<1x2xf32> to vector<8x2xf32>
      %30 = arith.addf %27, %29 : vector<8x2xf32>
      %c0_26 = arith.constant 0 : index
      %c0_27 = arith.constant 0 : index
      %31 = vector.load %arg8[%c0_26, %c0_27] : memref<8x2xf32, #tpu.memory_space<vmem>>, vector<8x2xf32>
      tpu.vector_store %arg8[%c0_26, %c0_27], %30 {strides = array<i32>} : memref<8x2xf32, #tpu.memory_space<vmem>>, vector<8x2xf32>,
    } else {
    }
    return
  }
  func.func @transform_0(%arg0: i32) -> (i32, i32) {
    %c0_i32 = arith.constant 0 : i32
    %c0_i32_0 = arith.constant 0 : i32
    return %c0_i32, %arg0 : i32, i32
  }
  func.func @transform_1(%arg0: i32) -> (i32, i32) {
    %c0_i32 = arith.constant 0 : i32
    %c0_i32_0 = arith.constant 0 : i32
    return %arg0, %c0_i32 : i32, i32
  }
  func.func @transform_2(%arg0: i32) -> (i32, i32) {
    %c0_i32 = arith.constant 0 : i32
    %c0_i32_0 = arith.constant 0 : i32
    %c0_i32_1 = arith.constant 0 : i32
    return %c0_i32, %c0_i32_0 : i32, i32
  }
  func.func @transform_3(%arg0: i32) -> (i32, i32) {
    %c0_i32 = arith.constant 0 : i32
    %c0_i32_0 = arith.constant 0 : i32
    %c0_i32_1 = arith.constant 0 : i32
    return %c0_i32, %c0_i32_0 : i32, i32
  }
  func.func @transform_4(%arg0: i32) -> (i32, i32) {
    %c0_i32 = arith.constant 0 : i32
    %c0_i32_0 = arith.constant 0 : i32
    %c0_i32_1 = arith.constant 0 : i32
    return %c0_i32, %c0_i32_0 : i32, i32
  }
  func.func @transform_5(%arg0: i32) -> (i32, i32) {
    %c0_i32 = arith.constant 0 : i32
    %c0_i32_0 = arith.constant 0 : i32
    %c0_i32_1 = arith.constant 0 : i32
    return %c0_i32, %c0_i32_0 : i32, i32
  }
  func.func @transform_6(%arg0: i32) -> (i32, i32) {
    %c0_i32 = arith.constant 0 : i32
    %c0_i32_0 = arith.constant 0 : i32
    %c0_i32_1 = arith.constant 0 : i32
    return %c0_i32, %c0_i32_0 : i32, i32
  }
  func.func @transform_7(%arg0: i32) -> (i32, i32) {
    %c0_i32 = arith.constant 0 : i32
    %c0_i32_0 = arith.constant 0 : i32
    %c0_i32_1 = arith.constant 0 : i32
    return %c0_i32, %c0_i32_0 : i32, i32
  }
}

</mosaic_0001>

<bundles_post_ra>
// kernel: tpu_custom_call.1
= control target key start
LH: loop header
LB: loop body
LE: loop exit
PB: predicated region body
PF: predicated region fallthrough
CT: control target
= control target key end

     0   :  { %12 = vsyncpa [#allocation4], 0  ;;  %s3420_s0 = inlined_call_operand.vmem [shape: f32[8,1024], index: 0, kind: input, shape index: {}]   ;;  %s3421_s1 = inlined_call_operand.hbm [shape: bf16[1024,512], index: 1, kind: input, shape index: {}]   ;;  %s3422_s2 = inlined_call_operand.vmem [shape: f32[1,512], index: 2, kind: input, shape index: {}]   ;;  %s3423_s3 = inlined_call_operand.hbm [shape: f32[512,128], index: 3, kind: input, shape index: {}]   ;;  %s3424_s4 = inlined_call_operand.vmem [shape: f32[1,128], index: 4, kind: input, shape index: {}]   ;;  %s3425_s5 = inlined_call_operand.vmem [shape: f32[128,2], index: 5, kind: input, shape index: {}]   ;;  %s3426_s6 = inlined_call_operand.vmem [shape: f32[1,2], index: 6, kind: input, shape index: {}]   ;;  %s3427_s7 = inlined_call_operand.vmem [shape: f32[8,2], index: 7, kind: output, shape index: {}]  }
   0x1   :  { %13 = vsyncpa [#allocation6], 0  ;;  %s3213_s24 = smov [#allocation3]   ;;  %s3165_s28 = scalar_lea.hbm %s3421_s1, 32768 }
   0x2   :  { %s21_s25 = sshll.u32 %s3213_s24, 4  ;;  %p3166_p0 = scmp.ne.s32.totalorder %s3421_s1, %s3165_s28  ;;  %s22_s25 = int_to_ptr.vmem [resolvable:$true] %s21_s25 }
   0x3   :  { %p3169_p1 = scmp.lt.u32.totalorder %s3165_s28, %s3421_s1 }
   0x5   :  { %p3171_p2 = pnand %p3169_p1, %p3166_p0 }
   0x7   :  { %3174 = shalt.err (!%p3171_p2)
}
   0x8   :  { %s3175_s10 = scalar_lea.vmem %s22_s25, 32768  ;;  %p3180_p4 = scmp.lt.s32.totalorder %s22_s25, %s22_s25 }
   0x9   :  { %p3176_p3 = scmp.ne.s32.totalorder %s22_s25, %s3175_s10  ;;  %p3181_p5 = scmp.lt.s32.totalorder %s3175_s10, %s3175_s10 }
   0xb   :  { %p3182_p6 = por %p3181_p5, %p3180_p4 }
   0xd   :  { %p3183_p7 = pnand %p3182_p6, %p3176_p3 }
   0xf   :  { %3186 = shalt.err (!%p3183_p7)
}
  0x10   :  { %s3214_s11 = smov 256   ;;  %s3215_s12 = smov 16  }
  0x11   :  { %27 = dma.hbm_to_vmem [thread:$0]  %s3421_s1, 32768, %s22_s25, [#allocation4], %s3214_s11, %s3214_s11, %s3215_s12  }
  0x12   :  { %s3216_s15 = smov [#allocation5]   ;;  %s3187_s19 = scalar_lea.hbm %s3423_s3, 8192 }
  0x13   :  { %s35_s16 = sshll.u32 %s3216_s15, 4  ;;  %p3188_p8 = scmp.ne.s32.totalorder %s3423_s3, %s3187_s19  ;;  %s36_s16 = int_to_ptr.vmem [resolvable:$true] %s35_s16 }
  0x14   :  { %p3191_p9 = scmp.lt.u32.totalorder %s3187_s19, %s3423_s3 }
  0x16   :  { %p3193_p10 = pnand %p3191_p9, %p3188_p8 }
  0x18   :  { %3196 = shalt.err (!%p3193_p10)
}
  0x19   :  { %s3197_s24 = scalar_lea.vmem %s36_s16, 8192  ;;  %p3202_p12 = scmp.lt.s32.totalorder %s36_s16, %s36_s16 }
  0x1a   :  { %p3198_p11 = scmp.ne.s32.totalorder %s36_s16, %s3197_s24  ;;  %p3203_p13 = scmp.lt.s32.totalorder %s3197_s24, %s3197_s24 }
  0x1c   :  { %p3204_p0 = por %p3203_p13, %p3202_p12 }
  0x1e   :  { %p3205_p1 = pnand %p3204_p0, %p3198_p11 }
  0x20   :  { %3208 = shalt.err (!%p3205_p1)
}
  0x21   :  { %s3217_s1 = smov 128   ;;  %s3218_s25 = smov 8  }
  0x22   :  { %41 = dma.hbm_to_vmem [thread:$0]  %s3423_s3, 8192, %s36_s16, [#allocation6], %s3217_s1, %s3217_s1, %s3218_s25  }
  0x23   :  { %3209 = dma.done.wait [#allocation4], 32768  }
  0x24   :  { %3210 = vsyncadd [#allocation4], 4294934528 }
  0x25   :  { %3211 = dma.done.wait [#allocation6], 8192  }
  0x26   :  { %3212 = vsyncadd [#allocation6], 4294959104  ;;  %v2781_v0 = vld [vmem:[#allocation3 + $0x4] ss:$16 sps:$4 sm:$0xff]   ;;  %v2785_v2 = vld [vmem:[#allocation3] ss:$16 sps:$4 sm:$0xff]  }
  0x27   :  { %v2783_v1 = vld [vmem:[#allocation3 + $0x204] ss:$16 sps:$4 sm:$0xff]   ;;  %1618 = vmatprep.subr.bf16.mxu0 %v2781_v0  ;;  %v2786_v3 = vld [vmem:[#allocation3 + $0x200] ss:$16 sps:$4 sm:$0xff]   ;;  %v67_v46 = vld [vmem:[%s3420_s0 + $0x8] sm:$0xff]  ;;  %vm3220_vm0 = vmmov 0  }
  0x28   :  { %1659 = vmatprep.subr.bf16.mxu1 %v2783_v1  ;;  %v2787_v4 = vld [vmem:[#allocation3 + $0x24] ss:$16 sps:$4 sm:$0xff]   ;;  %1619 = vmatpush1.bf16.msra.mxu0 %v2785_v2  ;;  %v2791_v6 = vld [vmem:[#allocation3 + $0x20] ss:$16 sps:$4 sm:$0xff]   ;;  %v3289_v49 = vpack.c.bf16 %v67_v46, %v67_v46  ;;  %v69_v50 = vld [vmem:[%s3420_s0 + $0x18] sm:$0xff]  ;;  %vm2296_vm1 = vcmask 15360  }
  0x29   :  { %1660 = vmatpush1.bf16.msra.mxu1 %v2786_v3  ;;  %v2789_v5 = vld [vmem:[#allocation3 + $0x224] ss:$16 sps:$4 sm:$0xff]   ;;  %1620 = vmatprep.subr.bf16.mxu0 %v2787_v4  ;;  %v2792_v7 = vld [vmem:[#allocation3 + $0x220] ss:$16 sps:$4 sm:$0xff]   ;;  %v3294_v52 = vpack.c.bf16 %v69_v50, %v69_v50 }
  0x2a   :  { %1661 = vmatprep.subr.bf16.mxu1 %v2789_v5  ;;  %v2793_v8 = vld [vmem:[#allocation3 + $0x44] ss:$16 sps:$4 sm:$0xff]   ;;  %v2797_v10 = vld [vmem:[#allocation3 + $0x40] ss:$16 sps:$4 sm:$0xff]   ;;  %1650 = vmatprep.mubr.bf16.mxu0 %v3289_v49 }
  0x2b   :  { %v2795_v9 = vld [vmem:[#allocation3 + $0x244] ss:$16 sps:$4 sm:$0xff]   ;;  %v2798_v11 = vld [vmem:[#allocation3 + $0x240] ss:$16 sps:$4 sm:$0xff]   ;;  %1691 = vmatprep.mubr.bf16.mxu1 %v3294_v52 }
  0x2c   :  { %1621 = vmatpush1.bf16.msra.mxu0 %v2791_v6  ;;  %v2799_v12 = vld [vmem:[#allocation3 + $0x64] ss:$16 sps:$4 sm:$0xff]   ;;  %v2803_v14 = vld [vmem:[#allocation3 + $0x60] ss:$16 sps:$4 sm:$0xff]  }
  0x2d   :  { %1662 = vmatpush1.bf16.msra.mxu1 %v2792_v7  ;;  %1622 = vmatprep.subr.bf16.mxu0 %v2793_v8  ;;  %v2801_v13 = vld [vmem:[#allocation3 + $0x264] ss:$16 sps:$4 sm:$0xff]   ;;  %v2804_v15 = vld [vmem:[#allocation3 + $0x260] ss:$16 sps:$4 sm:$0xff]  }
  0x2e   :  { %1663 = vmatprep.subr.bf16.mxu1 %v2795_v9  ;;  %v2805_v16 = vld [vmem:[#allocation3 + $0x84] ss:$16 sps:$4 sm:$0xff]   ;;  %v2809_v18 = vld [vmem:[#allocation3 + $0x80] ss:$16 sps:$4 sm:$0xff]  }
  0x2f   :  { %v2807_v17 = vld [vmem:[#allocation3 + $0x284] ss:$16 sps:$4 sm:$0xff]   ;;  %v2810_v19 = vld [vmem:[#allocation3 + $0x280] ss:$16 sps:$4 sm:$0xff]  }
  0x30   :  { %1623 = vmatpush1.bf16.msra.mxu0 %v2797_v10  ;;  %v2811_v20 = vld [vmem:[#allocation3 + $0xa4] ss:$16 sps:$4 sm:$0xff]   ;;  %v2815_v22 = vld [vmem:[#allocation3 + $0xa0] ss:$16 sps:$4 sm:$0xff]  }
  0x31   :  { %1664 = vmatpush1.bf16.msra.mxu1 %v2798_v11  ;;  %1624 = vmatprep.subr.bf16.mxu0 %v2799_v12  ;;  %v2813_v21 = vld [vmem:[#allocation3 + $0x2a4] ss:$16 sps:$4 sm:$0xff]   ;;  %v2816_v23 = vld [vmem:[#allocation3 + $0x2a0] ss:$16 sps:$4 sm:$0xff]  }
  0x32   :  { %1665 = vmatprep.subr.bf16.mxu1 %v2801_v13  ;;  %v2817_v24 = vld [vmem:[#allocation3 + $0xc4] ss:$16 sps:$4 sm:$0xff]   ;;  %v2821_v26 = vld [vmem:[#allocation3 + $0xc0] ss:$16 sps:$4 sm:$0xff]  }
  0x33   :  { %v2819_v25 = vld [vmem:[#allocation3 + $0x2c4] ss:$16 sps:$4 sm:$0xff]   ;;  %v2822_v27 = vld [vmem:[#allocation3 + $0x2c0] ss:$16 sps:$4 sm:$0xff]  }
  0x34   :  { %1625 = vmatpush1.bf16.msra.mxu0 %v2803_v14  ;;  %v2823_v28 = vld [vmem:[#allocation3 + $0xe4] ss:$16 sps:$4 sm:$0xff]   ;;  %v2827_v30 = vld [vmem:[#allocation3 + $0xe0] ss:$16 sps:$4 sm:$0xff]  }
  0x35   :  { %1666 = vmatpush1.bf16.msra.mxu1 %v2804_v15  ;;  %1626 = vmatprep.subr.bf16.mxu0 %v2805_v16  ;;  %v2825_v29 = vld [vmem:[#allocation3 + $0x2e4] ss:$16 sps:$4 sm:$0xff]   ;;  %v2828_v31 = vld [vmem:[#allocation3 + $0x2e0] ss:$16 sps:$4 sm:$0xff]  }
  0x36   :  { %1667 = vmatprep.subr.bf16.mxu1 %v2807_v17  ;;  %v2829_v32 = vld [vmem:[#allocation3 + $0x104] ss:$16 sps:$4 sm:$0xff]   ;;  %v2833_v34 = vld [vmem:[#allocation3 + $0x100] ss:$16 sps:$4 sm:$0xff]  }
  0x37   :  { %v2831_v33 = vld [vmem:[#allocation3 + $0x304] ss:$16 sps:$4 sm:$0xff]   ;;  %v2834_v35 = vld [vmem:[#allocation3 + $0x300] ss:$16 sps:$4 sm:$0xff]  }
  0x38   :  { %1627 = vmatpush1.bf16.msra.mxu0 %v2809_v18  ;;  %v2835_v36 = vld [vmem:[#allocation3 + $0x124] ss:$16 sps:$4 sm:$0xff]   ;;  %v2839_v38 = vld [vmem:[#allocation3 + $0x120] ss:$16 sps:$4 sm:$0xff]  }
  0x39   :  { %1668 = vmatpush1.bf16.msra.mxu1 %v2810_v19  ;;  %1628 = vmatprep.subr.bf16.mxu0 %v2811_v20  ;;  %v2837_v37 = vld [vmem:[#allocation3 + $0x324] ss:$16 sps:$4 sm:$0xff]   ;;  %v2840_v39 = vld [vmem:[#allocation3 + $0x320] ss:$16 sps:$4 sm:$0xff]  }
  0x3a   :  { %1669 = vmatprep.subr.bf16.mxu1 %v2813_v21  ;;  %v2841_v40 = vld [vmem:[#allocation3 + $0x144] ss:$16 sps:$4 sm:$0xff]   ;;  %v2845_v42 = vld [vmem:[#allocation3 + $0x140] ss:$16 sps:$4 sm:$0xff]  }
  0x3b   :  { %v2843_v41 = vld [vmem:[#allocation3 + $0x344] ss:$16 sps:$4 sm:$0xff]   ;;  %v2846_v43 = vld [vmem:[#allocation3 + $0x340] ss:$16 sps:$4 sm:$0xff]  }
  0x3c   :  { %1629 = vmatpush1.bf16.msra.mxu0 %v2815_v22  ;;  %v2847_v44 = vld [vmem:[#allocation3 + $0x164] ss:$16 sps:$4 sm:$0xff]   ;;  %v2851_v47 = vld [vmem:[#allocation3 + $0x160] ss:$16 sps:$4 sm:$0xff]  }
  0x3d   :  { %1670 = vmatpush1.bf16.msra.mxu1 %v2816_v23  ;;  %1630 = vmatprep.subr.bf16.mxu0 %v2817_v24  ;;  %v2849_v45 = vld [vmem:[#allocation3 + $0x364] ss:$16 sps:$4 sm:$0xff]   ;;  %v2852_v48 = vld [vmem:[#allocation3 + $0x360] ss:$16 sps:$4 sm:$0xff]  }
  0x3e   :  { %1671 = vmatprep.subr.bf16.mxu1 %v2819_v25  ;;  %v2853_v51 = vld [vmem:[#allocation3 + $0x184] ss:$16 sps:$4 sm:$0xff]   ;;  %v2857_v54 = vld [vmem:[#allocation3 + $0x180] ss:$16 sps:$4 sm:$0xff]  }
  0x3f   :  { %v2855_v53 = vld [vmem:[#allocation3 + $0x384] ss:$16 sps:$4 sm:$0xff]   ;;  %v2858_v55 = vld [vmem:[#allocation3 + $0x380] ss:$16 sps:$4 sm:$0xff]  }
  0x40   :  { %1631 = vmatpush1.bf16.msra.mxu0 %v2821_v26  ;;  %v2859_v56 = vld [vmem:[#allocation3 + $0x1a4] ss:$16 sps:$4 sm:$0xff]   ;;  %v2863_v58 = vld [vmem:[#allocation3 + $0x1a0] ss:$16 sps:$4 sm:$0xff]  }
  0x41   :  { %1672 = vmatpush1.bf16.msra.mxu1 %v2822_v27  ;;  %1632 = vmatprep.subr.bf16.mxu0 %v2823_v28  ;;  %v2861_v57 = vld [vmem:[#allocation3 + $0x3a4] ss:$16 sps:$4 sm:$0xff]   ;;  %v2864_v59 = vld [vmem:[#allocation3 + $0x3a0] ss:$16 sps:$4 sm:$0xff]  }
  0x42   :  { %1673 = vmatprep.subr.bf16.mxu1 %v2825_v29  ;;  %v2865_v60 = vld [vmem:[#allocation3 + $0x1c4] ss:$16 sps:$4 sm:$0xff]   ;;  %v2869_v62 = vld [vmem:[#allocation3 + $0x1c0] ss:$16 sps:$4 sm:$0xff]  }
  0x43   :  { %v2867_v61 = vld [vmem:[#allocation3 + $0x3c4] ss:$16 sps:$4 sm:$0xff]   ;;  %v2870_v63 = vld [vmem:[#allocation3 + $0x3c0] ss:$16 sps:$4 sm:$0xff]  }
  0x44   :  { %1633 = vmatpush1.bf16.msra.mxu0 %v2827_v30  ;;  %v2871_v0 = vld [vmem:[#allocation3 + $0x1e4] ss:$16 sps:$4 sm:$0xff]   ;;  %v2875_v2 = vld [vmem:[#allocation3 + $0x1e0] ss:$16 sps:$4 sm:$0xff]  }
  0x45   :  { %1674 = vmatpush1.bf16.msra.mxu1 %v2828_v31  ;;  %1634 = vmatprep.subr.bf16.mxu0 %v2829_v32  ;;  %v2873_v1 = vld [vmem:[#allocation3 + $0x3e4] ss:$16 sps:$4 sm:$0xff]   ;;  %v2876_v3 = vld [vmem:[#allocation3 + $0x3e0] ss:$16 sps:$4 sm:$0xff]  }
  0x46   :  { %1675 = vmatprep.subr.bf16.mxu1 %v2831_v33  ;;  %v66_v4 = vld [vmem:[%s3420_s0] sm:$0xff]  ;;  %v68_v5 = vld [vmem:[%s3420_s0 + $0x10] sm:$0xff] }
  0x47   :  { %v2879_v6 = vld [vmem:[#allocation3 + $0x404] ss:$16 sps:$4 sm:$0xff]   ;;  %v3304_v8 = vpack.c.bf16 %v66_v4, %v66_v4  ;;  %v3306_v9 = vpack.c.bf16 %v68_v5, %v68_v5  ;;  %v2877_v10 = vld [vmem:[#allocation3 + $0x400] ss:$16 sps:$4 sm:$0xff]  }
  0x48   :  { %1635 = vmatpush1.bf16.msra.mxu0 %v2833_v34  ;;  %v2882_v7 = vld [vmem:[#allocation3 + $0x604] ss:$16 sps:$4 sm:$0xff]   ;;  %v2880_v11 = vld [vmem:[#allocation3 + $0x600] ss:$16 sps:$4 sm:$0xff]   ;;  %v71_v34 = vld [vmem:[%s3420_s0 + $0x28] sm:$0xff] }
  0x49   :  { %1676 = vmatpush1.bf16.msra.mxu1 %v2834_v35  ;;  %1636 = vmatprep.subr.bf16.mxu0 %v2835_v36  ;;  %v2885_v12 = vld [vmem:[#allocation3 + $0x424] ss:$16 sps:$4 sm:$0xff]   ;;  %v2883_v14 = vld [vmem:[#allocation3 + $0x420] ss:$16 sps:$4 sm:$0xff]  }
  0x4a   :  { %1677 = vmatprep.subr.bf16.mxu1 %v2837_v37  ;;  %v2888_v13 = vld [vmem:[#allocation3 + $0x624] ss:$16 sps:$4 sm:$0xff]   ;;  %v2886_v15 = vld [vmem:[#allocation3 + $0x620] ss:$16 sps:$4 sm:$0xff]   ;;  %v3313_v37 = vpack.c.bf16 %v71_v34, %v71_v34  ;;  %v2991_v34 = vld [vmem:[#allocation3 + $0x68] ss:$16 sps:$4 sm:$0xff]  }
  0x4b   :  { %v2891_v16 = vld [vmem:[#allocation3 + $0x444] ss:$16 sps:$4 sm:$0xff]   ;;  %v2889_v18 = vld [vmem:[#allocation3 + $0x440] ss:$16 sps:$4 sm:$0xff]  }
  0x4c   :  { %1637 = vmatpush1.bf16.msra.mxu0 %v2839_v38  ;;  %v2894_v17 = vld [vmem:[#allocation3 + $0x644] ss:$16 sps:$4 sm:$0xff]   ;;  %v2892_v19 = vld [vmem:[#allocation3 + $0x640] ss:$16 sps:$4 sm:$0xff]   ;;  %v73_v38 = vld [vmem:[%s3420_s0 + $0x38] sm:$0xff] }
  0x4d   :  { %1678 = vmatpush1.bf16.msra.mxu1 %v2840_v39  ;;  %1638 = vmatprep.subr.bf16.mxu0 %v2841_v40  ;;  %v2897_v20 = vld [vmem:[#allocation3 + $0x464] ss:$16 sps:$4 sm:$0xff]   ;;  %v2895_v22 = vld [vmem:[#allocation3 + $0x460] ss:$16 sps:$4 sm:$0xff]   ;;  %v3318_v40 = vpack.c.bf16 %v73_v38, %v73_v38  ;;  %v3002_v38 = vld [vmem:[#allocation3 + $0x28c] ss:$16 sps:$4 sm:$0xff]  }
  0x4e   :  { %1679 = vmatprep.subr.bf16.mxu1 %v2843_v41  ;;  %v2900_v21 = vld [vmem:[#allocation3 + $0x664] ss:$16 sps:$4 sm:$0xff]   ;;  %v2898_v23 = vld [vmem:[#allocation3 + $0x660] ss:$16 sps:$4 sm:$0xff]  }
  0x4f   :  { %v2903_v24 = vld [vmem:[#allocation3 + $0x484] ss:$16 sps:$4 sm:$0xff]   ;;  %v2901_v26 = vld [vmem:[#allocation3 + $0x480] ss:$16 sps:$4 sm:$0xff]  }
  0x50   :  { %1639 = vmatpush1.bf16.msra.mxu0 %v2845_v42  ;;  %v2906_v25 = vld [vmem:[#allocation3 + $0x684] ss:$16 sps:$4 sm:$0xff]   ;;  %v2904_v27 = vld [vmem:[#allocation3 + $0x680] ss:$16 sps:$4 sm:$0xff]  }
  0x51   :  { %1680 = vmatpush1.bf16.msra.mxu1 %v2846_v43  ;;  %1640 = vmatprep.subr.bf16.mxu0 %v2847_v44  ;;  %v2909_v28 = vld [vmem:[#allocation3 + $0x4a4] ss:$16 sps:$4 sm:$0xff]   ;;  %v2907_v30 = vld [vmem:[#allocation3 + $0x4a0] ss:$16 sps:$4 sm:$0xff]  }
  0x52   :  { %1681 = vmatprep.subr.bf16.mxu1 %v2849_v45  ;;  %v2912_v29 = vld [vmem:[#allocation3 + $0x6a4] ss:$16 sps:$4 sm:$0xff]   ;;  %v2910_v31 = vld [vmem:[#allocation3 + $0x6a0] ss:$16 sps:$4 sm:$0xff]  }
  0x53   :  { %v2915_v32 = vld [vmem:[#allocation3 + $0x4c4] ss:$16 sps:$4 sm:$0xff]   ;;  %v2913_v35 = vld [vmem:[#allocation3 + $0x4c0] ss:$16 sps:$4 sm:$0xff]  }
  0x54   :  { %1641 = vmatpush1.bf16.msra.mxu0 %v2851_v47  ;;  %v2918_v33 = vld [vmem:[#allocation3 + $0x6c4] ss:$16 sps:$4 sm:$0xff]   ;;  %v2916_v36 = vld [vmem:[#allocation3 + $0x6c0] ss:$16 sps:$4 sm:$0xff]  }
  0x55   :  { %1682 = vmatpush1.bf16.msra.mxu1 %v2852_v48  ;;  %1642 = vmatprep.subr.bf16.mxu0 %v2853_v51  ;;  %v2921_v39 = vld [vmem:[#allocation3 + $0x4e4] ss:$16 sps:$4 sm:$0xff]   ;;  %v2919_v42 = vld [vmem:[#allocation3 + $0x4e0] ss:$16 sps:$4 sm:$0xff]  }
  0x56   :  { %1683 = vmatprep.subr.bf16.mxu1 %v2855_v53  ;;  %v2924_v41 = vld [vmem:[#allocation3 + $0x6e4] ss:$16 sps:$4 sm:$0xff]   ;;  %v2922_v43 = vld [vmem:[#allocation3 + $0x6e0] ss:$16 sps:$4 sm:$0xff]  }
  0x57   :  { %v2927_v44 = vld [vmem:[#allocation3 + $0x504] ss:$16 sps:$4 sm:$0xff]   ;;  %v2925_v46 = vld [vmem:[#allocation3 + $0x500] ss:$16 sps:$4 sm:$0xff]  }
  0x58   :  { %1643 = vmatpush1.bf16.msra.mxu0 %v2857_v54  ;;  %v2930_v45 = vld [vmem:[#allocation3 + $0x704] ss:$16 sps:$4 sm:$0xff]   ;;  %v2928_v47 = vld [vmem:[#allocation3 + $0x700] ss:$16 sps:$4 sm:$0xff]  }
  0x59   :  { %1684 = vmatpush1.bf16.msra.mxu1 %v2858_v55  ;;  %1644 = vmatprep.subr.bf16.mxu0 %v2859_v56  ;;  %v2933_v48 = vld [vmem:[#allocation3 + $0x524] ss:$16 sps:$4 sm:$0xff]   ;;  %v2931_v51 = vld [vmem:[#allocation3 + $0x520] ss:$16 sps:$4 sm:$0xff]  }
  0x5a   :  { %1685 = vmatprep.subr.bf16.mxu1 %v2861_v57  ;;  %v2936_v50 = vld [vmem:[#allocation3 + $0x724] ss:$16 sps:$4 sm:$0xff]   ;;  %v2934_v53 = vld [vmem:[#allocation3 + $0x720] ss:$16 sps:$4 sm:$0xff]  }
  0x5b   :  { %v2939_v54 = vld [vmem:[#allocation3 + $0x544] ss:$16 sps:$4 sm:$0xff]   ;;  %v2937_v56 = vld [vmem:[#allocation3 + $0x540] ss:$16 sps:$4 sm:$0xff]  }
  0x5c   :  { %1645 = vmatpush1.bf16.msra.mxu0 %v2863_v58  ;;  %v2942_v55 = vld [vmem:[#allocation3 + $0x744] ss:$16 sps:$4 sm:$0xff]   ;;  %v2940_v57 = vld [vmem:[#allocation3 + $0x740] ss:$16 sps:$4 sm:$0xff]  }
  0x5d   :  { %1686 = vmatpush1.bf16.msra.mxu1 %v2864_v59  ;;  %1646 = vmatprep.subr.bf16.mxu0 %v2865_v60  ;;  %v2945_v58 = vld [vmem:[#allocation3 + $0x564] ss:$16 sps:$4 sm:$0xff]   ;;  %v2943_v60 = vld [vmem:[#allocation3 + $0x560] ss:$16 sps:$4 sm:$0xff]  }
  0x5e   :  { %1687 = vmatprep.subr.bf16.mxu1 %v2867_v61  ;;  %v2948_v59 = vld [vmem:[#allocation3 + $0x764] ss:$16 sps:$4 sm:$0xff]   ;;  %v2946_v61 = vld [vmem:[#allocation3 + $0x760] ss:$16 sps:$4 sm:$0xff]  }
  0x5f   :  { %v2955_v4 = vld [vmem:[#allocation3 + $0x5a0] ss:$16 sps:$4 sm:$0xff]  }
  0x60   :  { %1647 = vmatpush1.bf16.msra.mxu0 %v2869_v62  ;;  %v2951_v62 = vld [vmem:[#allocation3 + $0x584] ss:$16 sps:$4 sm:$0xff]   ;;  %v2958_v5 = vld [vmem:[#allocation3 + $0x7a0] ss:$16 sps:$4 sm:$0xff]  }
  0x61   :  { %1688 = vmatpush1.bf16.msra.mxu1 %v2870_v63  ;;  %1648 = vmatprep.subr.bf16.mxu0 %v2871_v0  ;;  %v2954_v63 = vld [vmem:[#allocation3 + $0x784] ss:$16 sps:$4 sm:$0xff]   ;;  %v2949_v0 = vld [vmem:[#allocation3 + $0x580] ss:$16 sps:$4 sm:$0xff]  }
  0x62   :  { %1689 = vmatprep.subr.bf16.mxu1 %v2873_v1  ;;  %v2952_v1 = vld [vmem:[#allocation3 + $0x780] ss:$16 sps:$4 sm:$0xff]  }
  0x64   :  { %1649 = vmatpush1.bf16.msra.mxu0 %v2875_v2  ;;  %v2957_v2 = vld [vmem:[#allocation3 + $0x5a4] ss:$16 sps:$4 sm:$0xff]  }
  0x65   :  { %1690 = vmatpush1.bf16.msra.mxu1 %v2876_v3  ;;  %1700 = vmatprep.subr.bf16.mxu0 %v2879_v6  ;;  %v2960_v3 = vld [vmem:[#allocation3 + $0x7a4] ss:$16 sps:$4 sm:$0xff]  }
  0x66   :  { %1741 = vmatprep.subr.bf16.mxu1 %v2882_v7  ;;  %v2963_v6 = vld [vmem:[#allocation3 + $0x5c4] ss:$16 sps:$4 sm:$0xff]  }
  0x67   :  { %1651 = vmatmul.mubr.bf16.vlgmr.msra.gmra.mrb[0].mxu0 %v3304_v8  ;;  %v2966_v7 = vld [vmem:[#allocation3 + $0x7c4] ss:$16 sps:$4 sm:$0xff]  }
  0x68   :  { %1692 = vmatmul.mubr.bf16.vlgmr.msra.gmra.mrb[0].mxu1 %v3306_v9  ;;  %1701 = vmatpush1.bf16.msra.mxu0 %v2877_v10  ;;  %v2961_v10 = vld [vmem:[#allocation3 + $0x5c0] ss:$16 sps:$4 sm:$0xff]  }
  0x69   :  { %1742 = vmatpush1.bf16.msra.mxu1 %v2880_v11  ;;  %1702 = vmatprep.subr.bf16.mxu0 %v2885_v12  ;;  %v2964_v11 = vld [vmem:[#allocation3 + $0x7c0] ss:$16 sps:$4 sm:$0xff]   ;;  %v2969_v12 = vld [vmem:[#allocation3 + $0x5e4] ss:$16 sps:$4 sm:$0xff]  }
  0x6a   :  { %1743 = vmatprep.subr.bf16.mxu1 %v2888_v13  ;;  %1732 = vmatprep.mubr.bf16.mxu0 %v3313_v37  ;;  %v2972_v13 = vld [vmem:[#allocation3 + $0x7e4] ss:$16 sps:$4 sm:$0xff]  }
  0x6b   :  { %1773 = vmatprep.mubr.bf16.mxu1 %v3318_v40 }
  0x6c   :  { %1703 = vmatpush1.bf16.msra.mxu0 %v2883_v14  ;;  %v2967_v14 = vld [vmem:[#allocation3 + $0x5e0] ss:$16 sps:$4 sm:$0xff]  }
  0x6d   :  { %1744 = vmatpush1.bf16.msra.mxu1 %v2886_v15  ;;  %1704 = vmatprep.subr.bf16.mxu0 %v2891_v16  ;;  %v2970_v15 = vld [vmem:[#allocation3 + $0x7e0] ss:$16 sps:$4 sm:$0xff]  }
  0x6e   :  { %1745 = vmatprep.subr.bf16.mxu1 %v2894_v17  ;;  %v70_v16 = vld [vmem:[%s3420_s0 + $0x20] sm:$0xff]  ;;  %v72_v17 = vld [vmem:[%s3420_s0 + $0x30] sm:$0xff] }
  0x70   :  { %1705 = vmatpush1.bf16.msra.mxu0 %v2889_v18  ;;  %v2975_v18 = vld [vmem:[#allocation3 + $0xc] ss:$16 sps:$4 sm:$0xff]  }
  0x71   :  { %1746 = vmatpush1.bf16.msra.mxu1 %v2892_v19  ;;  %1706 = vmatprep.subr.bf16.mxu0 %v2897_v20  ;;  %v2978_v19 = vld [vmem:[#allocation3 + $0x20c] ss:$16 sps:$4 sm:$0xff]   ;;  %v3328_v20 = vpack.c.bf16 %v70_v16, %v70_v16 }
  0x72   :  { %1747 = vmatprep.subr.bf16.mxu1 %v2900_v21  ;;  %v3330_v21 = vpack.c.bf16 %v72_v17, %v72_v17  ;;  %v3059_v16 = vld [vmem:[#allocation3 + $0x1cc] ss:$16 sps:$4 sm:$0xff]  }
  0x73   :  { %v3062_v17 = vld [vmem:[#allocation3 + $0x3cc] ss:$16 sps:$4 sm:$0xff]  }
  0x74   :  { %1707 = vmatpush1.bf16.msra.mxu0 %v2895_v22  ;;  %v2973_v22 = vld [vmem:[#allocation3 + $0x8] ss:$16 sps:$4 sm:$0xff]  }
  0x75   :  { %1748 = vmatpush1.bf16.msra.mxu1 %v2898_v23  ;;  %1708 = vmatprep.subr.bf16.mxu0 %v2903_v24  ;;  %v2976_v23 = vld [vmem:[#allocation3 + $0x208] ss:$16 sps:$4 sm:$0xff]   ;;  %v2981_v24 = vld [vmem:[#allocation3 + $0x2c] ss:$16 sps:$4 sm:$0xff]  }
  0x76   :  { %1749 = vmatprep.subr.bf16.mxu1 %v2906_v25  ;;  %v2984_v25 = vld [vmem:[#allocation3 + $0x22c] ss:$16 sps:$4 sm:$0xff]  }
  0x78   :  { %1709 = vmatpush1.bf16.msra.mxu0 %v2901_v26  ;;  %v2979_v26 = vld [vmem:[#allocation3 + $0x28] ss:$16 sps:$4 sm:$0xff]  }
  0x79   :  { %1750 = vmatpush1.bf16.msra.mxu1 %v2904_v27  ;;  %1710 = vmatprep.subr.bf16.mxu0 %v2909_v28  ;;  %v2982_v27 = vld [vmem:[#allocation3 + $0x228] ss:$16 sps:$4 sm:$0xff]   ;;  %v2987_v28 = vld [vmem:[#allocation3 + $0x4c] ss:$16 sps:$4 sm:$0xff]  }
  0x7a   :  { %1751 = vmatprep.subr.bf16.mxu1 %v2912_v29  ;;  %v2990_v29 = vld [vmem:[#allocation3 + $0x24c] ss:$16 sps:$4 sm:$0xff]  }
  0x7c   :  { %1711 = vmatpush1.bf16.msra.mxu0 %v2907_v30  ;;  %v2985_v30 = vld [vmem:[#allocation3 + $0x48] ss:$16 sps:$4 sm:$0xff]  }
  0x7d   :  { %1752 = vmatpush1.bf16.msra.mxu1 %v2910_v31  ;;  %1712 = vmatprep.subr.bf16.mxu0 %v2915_v32  ;;  %v2988_v31 = vld [vmem:[#allocation3 + $0x248] ss:$16 sps:$4 sm:$0xff]   ;;  %v2993_v32 = vld [vmem:[#allocation3 + $0x6c] ss:$16 sps:$4 sm:$0xff]  }
  0x7e   :  { %1753 = vmatprep.subr.bf16.mxu1 %v2918_v33  ;;  %v2996_v33 = vld [vmem:[#allocation3 + $0x26c] ss:$16 sps:$4 sm:$0xff]  }
  0x80   :  { %1713 = vmatpush1.bf16.msra.mxu0 %v2913_v35  ;;  %v2994_v35 = vld [vmem:[#allocation3 + $0x268] ss:$16 sps:$4 sm:$0xff]  }
  0x81   :  { %1754 = vmatpush1.bf16.msra.mxu1 %v2916_v36  ;;  %1714 = vmatprep.subr.bf16.mxu0 %v2921_v39  ;;  %v2999_v36 = vld [vmem:[#allocation3 + $0x8c] ss:$16 sps:$4 sm:$0xff]   ;;  %v2997_v39 = vld [vmem:[#allocation3 + $0x88] ss:$16 sps:$4 sm:$0xff]  }
  0x82   :  { %1755 = vmatprep.subr.bf16.mxu1 %v2924_v41  ;;  %v3008_v41 = vld [vmem:[#allocation3 + $0x2ac] ss:$16 sps:$4 sm:$0xff]  }
  0x84   :  { %1715 = vmatpush1.bf16.msra.mxu0 %v2919_v42  ;;  %v3003_v42 = vld [vmem:[#allocation3 + $0xa8] ss:$16 sps:$4 sm:$0xff]  }
  0x85   :  { %1756 = vmatpush1.bf16.msra.mxu1 %v2922_v43  ;;  %1716 = vmatprep.subr.bf16.mxu0 %v2927_v44  ;;  %v3006_v43 = vld [vmem:[#allocation3 + $0x2a8] ss:$16 sps:$4 sm:$0xff]   ;;  %v3011_v44 = vld [vmem:[#allocation3 + $0xcc] ss:$16 sps:$4 sm:$0xff]  }
  0x86   :  { %1757 = vmatprep.subr.bf16.mxu1 %v2930_v45  ;;  %v3014_v45 = vld [vmem:[#allocation3 + $0x2cc] ss:$16 sps:$4 sm:$0xff]  }
  0x88   :  { %1717 = vmatpush1.bf16.msra.mxu0 %v2925_v46  ;;  %v3009_v46 = vld [vmem:[#allocation3 + $0xc8] ss:$16 sps:$4 sm:$0xff]  }
  0x89   :  { %1758 = vmatpush1.bf16.msra.mxu1 %v2928_v47  ;;  %1718 = vmatprep.subr.bf16.mxu0 %v2933_v48  ;;  %v3012_v47 = vld [vmem:[#allocation3 + $0x2c8] ss:$16 sps:$4 sm:$0xff]   ;;  %v3017_v48 = vld [vmem:[#allocation3 + $0xec] ss:$16 sps:$4 sm:$0xff]  }
  0x8a   :  { %1759 = vmatprep.subr.bf16.mxu1 %v2936_v50  ;;  %v3020_v50 = vld [vmem:[#allocation3 + $0x2ec] ss:$16 sps:$4 sm:$0xff]  }
  0x8c   :  { %1719 = vmatpush1.bf16.msra.mxu0 %v2931_v51  ;;  %v3015_v51 = vld [vmem:[#allocation3 + $0xe8] ss:$16 sps:$4 sm:$0xff]  }
  0x8d   :  { %1760 = vmatpush1.bf16.msra.mxu1 %v2934_v53  ;;  %1720 = vmatprep.subr.bf16.mxu0 %v2939_v54  ;;  %v3018_v53 = vld [vmem:[#allocation3 + $0x2e8] ss:$16 sps:$4 sm:$0xff]   ;;  %v3023_v54 = vld [vmem:[#allocation3 + $0x10c] ss:$16 sps:$4 sm:$0xff]  }
  0x8e   :  { %1761 = vmatprep.subr.bf16.mxu1 %v2942_v55  ;;  %v3026_v55 = vld [vmem:[#allocation3 + $0x30c] ss:$16 sps:$4 sm:$0xff]  }
  0x90   :  { %1721 = vmatpush1.bf16.msra.mxu0 %v2937_v56  ;;  %v3021_v56 = vld [vmem:[#allocation3 + $0x108] ss:$16 sps:$4 sm:$0xff]  }
  0x91   :  { %1762 = vmatpush1.bf16.msra.mxu1 %v2940_v57  ;;  %1722 = vmatprep.subr.bf16.mxu0 %v2945_v58  ;;  %v3024_v57 = vld [vmem:[#allocation3 + $0x308] ss:$16 sps:$4 sm:$0xff]   ;;  %v3029_v58 = vld [vmem:[#allocation3 + $0x12c] ss:$16 sps:$4 sm:$0xff]  }
  0x92   :  { %1763 = vmatprep.subr.bf16.mxu1 %v2948_v59  ;;  %v3032_v59 = vld [vmem:[#allocation3 + $0x32c] ss:$16 sps:$4 sm:$0xff]  }
  0x94   :  { %1723 = vmatpush1.bf16.msra.mxu0 %v2943_v60  ;;  %v3027_v60 = vld [vmem:[#allocation3 + $0x128] ss:$16 sps:$4 sm:$0xff]  }
  0x95   :  { %1764 = vmatpush1.bf16.msra.mxu1 %v2946_v61  ;;  %1724 = vmatprep.subr.bf16.mxu0 %v2951_v62  ;;  %v3030_v61 = vld [vmem:[#allocation3 + $0x328] ss:$16 sps:$4 sm:$0xff]   ;;  %v3035_v62 = vld [vmem:[#allocation3 + $0x14c] ss:$16 sps:$4 sm:$0xff]  }
  0x96   :  { %1765 = vmatprep.subr.bf16.mxu1 %v2954_v63  ;;  %v3038_v63 = vld [vmem:[#allocation3 + $0x34c] ss:$16 sps:$4 sm:$0xff]  }
  0x98   :  { %1725 = vmatpush1.bf16.msra.mxu0 %v2949_v0  ;;  %v3033_v0 = vld [vmem:[#allocation3 + $0x148] ss:$16 sps:$4 sm:$0xff]  }
  0x99   :  { %1766 = vmatpush1.bf16.msra.mxu1 %v2952_v1  ;;  %1726 = vmatprep.subr.bf16.mxu0 %v2957_v2  ;;  %v3036_v1 = vld [vmem:[#allocation3 + $0x348] ss:$16 sps:$4 sm:$0xff]   ;;  %v3041_v2 = vld [vmem:[#allocation3 + $0x16c] ss:$16 sps:$4 sm:$0xff]  }
  0x9a   :  { %1767 = vmatprep.subr.bf16.mxu1 %v2960_v3  ;;  %v3044_v3 = vld [vmem:[#allocation3 + $0x36c] ss:$16 sps:$4 sm:$0xff]  }
  0x9c   :  { %1727 = vmatpush1.bf16.msra.mxu0 %v2955_v4  ;;  %v3039_v4 = vld [vmem:[#allocation3 + $0x168] ss:$16 sps:$4 sm:$0xff]  }
  0x9d   :  { %1768 = vmatpush1.bf16.msra.mxu1 %v2958_v5  ;;  %1728 = vmatprep.subr.bf16.mxu0 %v2963_v6  ;;  %v3042_v5 = vld [vmem:[#allocation3 + $0x368] ss:$16 sps:$4 sm:$0xff]   ;;  %v3047_v6 = vld [vmem:[#allocation3 + $0x18c] ss:$16 sps:$4 sm:$0xff]  }
  0x9e   :  { %1769 = vmatprep.subr.bf16.mxu1 %v2966_v7  ;;  %v3050_v7 = vld [vmem:[#allocation3 + $0x38c] ss:$16 sps:$4 sm:$0xff]  }
  0xa0   :  { %1729 = vmatpush1.bf16.msra.mxu0 %v2961_v10  ;;  %v3045_v10 = vld [vmem:[#allocation3 + $0x188] ss:$16 sps:$4 sm:$0xff]  }
  0xa1   :  { %1770 = vmatpush1.bf16.msra.mxu1 %v2964_v11  ;;  %1730 = vmatprep.subr.bf16.mxu0 %v2969_v12  ;;  %v3048_v11 = vld [vmem:[#allocation3 + $0x388] ss:$16 sps:$4 sm:$0xff]   ;;  %v3053_v12 = vld [vmem:[#allocation3 + $0x1ac] ss:$16 sps:$4 sm:$0xff]  }
  0xa2   :  { %1771 = vmatprep.subr.bf16.mxu1 %v2972_v13  ;;  %v3056_v13 = vld [vmem:[#allocation3 + $0x3ac] ss:$16 sps:$4 sm:$0xff]  }
  0xa4   :  { %1731 = vmatpush1.bf16.msra.mxu0 %v2967_v14  ;;  %v3051_v14 = vld [vmem:[#allocation3 + $0x1a8] ss:$16 sps:$4 sm:$0xff]  }
  0xa5   :  { %1772 = vmatpush1.bf16.msra.mxu1 %v2970_v15  ;;  %1782 = vmatprep.subr.bf16.mxu0 %v2975_v18  ;;  %v3054_v15 = vld [vmem:[#allocation3 + $0x3a8] ss:$16 sps:$4 sm:$0xff]  }
  0xa6   :  { %1823 = vmatprep.subr.bf16.mxu1 %v2978_v19  ;;  %v3057_v18 = vld [vmem:[#allocation3 + $0x1c8] ss:$16 sps:$4 sm:$0xff]  }
  0xa7   :  { %1733 = vmatmul.mubr.bf16.vlgmr.msra.gmra.mrb[4].mxu0 %v3328_v20  ;;  %v3060_v19 = vld [vmem:[#allocation3 + $0x3c8] ss:$16 sps:$4 sm:$0xff]  }
  0xa8   :  { %1774 = vmatmul.mubr.bf16.vlgmr.msra.gmra.mrb[4].mxu1 %v3330_v21  ;;  %1783 = vmatpush1.bf16.msra.mxu0 %v2973_v22  ;;  %v3065_v22 = vld [vmem:[#allocation3 + $0x1ec] ss:$16 sps:$4 sm:$0xff]  }
  0xa9   :  { %1824 = vmatpush1.bf16.msra.mxu1 %v2976_v23  ;;  %1784 = vmatprep.subr.bf16.mxu0 %v2981_v24  ;;  %v3068_v23 = vld [vmem:[#allocation3 + $0x3ec] ss:$16 sps:$4 sm:$0xff]   ;;  %v3063_v24 = vld [vmem:[#allocation3 + $0x1e8] ss:$16 sps:$4 sm:$0xff]  }
  0xaa   :  { %1825 = vmatprep.subr.bf16.mxu1 %v2984_v25  ;;  %1814 = vmatprep.mubr.bf16.mxu0 %v3289_v49  ;;  %v3000_v49 = vld [vmem:[#allocation3 + $0x288] ss:$16 sps:$4 sm:$0xff]  }
  0xab   :  { %1855 = vmatprep.mubr.bf16.mxu1 %v3294_v52  ;;  %v3005_v52 = vld [vmem:[#allocation3 + $0xac] ss:$16 sps:$4 sm:$0xff]   ;;  %v3066_v25 = vld [vmem:[#allocation3 + $0x3e8] ss:$16 sps:$4 sm:$0xff]  }
  0xac   :  { %1785 = vmatpush1.bf16.msra.mxu0 %v2979_v26  ;;  %v3071_v26 = vld [vmem:[#allocation3 + $0x40c] ss:$16 sps:$4 sm:$0xff]  }
  0xad   :  { %1826 = vmatpush1.bf16.msra.mxu1 %v2982_v27  ;;  %1786 = vmatprep.subr.bf16.mxu0 %v2987_v28  ;;  %v3074_v27 = vld [vmem:[#allocation3 + $0x60c] ss:$16 sps:$4 sm:$0xff]   ;;  %v3069_v28 = vld [vmem:[#allocation3 + $0x408] ss:$16 sps:$4 sm:$0xff]  }
  0xae   :  { %1827 = vmatprep.subr.bf16.mxu1 %v2990_v29  ;;  %v3072_v29 = vld [vmem:[#allocation3 + $0x608] ss:$16 sps:$4 sm:$0xff]  }
  0xb0   :  { %1787 = vmatpush1.bf16.msra.mxu0 %v2985_v30  ;;  %v3077_v30 = vld [vmem:[#allocation3 + $0x42c] ss:$16 sps:$4 sm:$0xff]  }
  0xb1   :  { %1828 = vmatpush1.bf16.msra.mxu1 %v2988_v31  ;;  %1788 = vmatprep.subr.bf16.mxu0 %v2993_v32  ;;  %v3080_v31 = vld [vmem:[#allocation3 + $0x62c] ss:$16 sps:$4 sm:$0xff]   ;;  %v3075_v32 = vld [vmem:[#allocation3 + $0x428] ss:$16 sps:$4 sm:$0xff]  }
  0xb2   :  { %1829 = vmatprep.subr.bf16.mxu1 %v2996_v33  ;;  %v3078_v33 = vld [vmem:[#allocation3 + $0x628] ss:$16 sps:$4 sm:$0xff]  }
  0xb4   :  { %1789 = vmatpush1.bf16.msra.mxu0 %v2991_v34  ;;  %v3083_v34 = vld [vmem:[#allocation3 + $0x44c] ss:$16 sps:$4 sm:$0xff]  }
  0xb5   :  { %1830 = vmatpush1.bf16.msra.mxu1 %v2994_v35  ;;  %1790 = vmatprep.subr.bf16.mxu0 %v2999_v36  ;;  %v3086_v35 = vld [vmem:[#allocation3 + $0x64c] ss:$16 sps:$4 sm:$0xff]   ;;  %v3081_v36 = vld [vmem:[#allocation3 + $0x448] ss:$16 sps:$4 sm:$0xff]  }
  0xb6   :  { %1831 = vmatprep.subr.bf16.mxu1 %v3002_v38  ;;  %v3084_v38 = vld [vmem:[#allocation3 + $0x648] ss:$16 sps:$4 sm:$0xff]  }
  0xb8   :  { %1791 = vmatpush1.bf16.msra.mxu0 %v2997_v39  ;;  %v3087_v39 = vld [vmem:[#allocation3 + $0x468] ss:$16 sps:$4 sm:$0xff]  }
  0xb9   :  { %1832 = vmatpush1.bf16.msra.mxu1 %v3000_v49  ;;  %1792 = vmatprep.subr.bf16.mxu0 %v3005_v52  ;;  %v3090_v49 = vld [vmem:[#allocation3 + $0x668] ss:$16 sps:$4 sm:$0xff]   ;;  %v3095_v52 = vld [vmem:[#allocation3 + $0x48c] ss:$16 sps:$4 sm:$0xff]  }
  0xba   :  { %1833 = vmatprep.subr.bf16.mxu1 %v3008_v41  ;;  %v3098_v41 = vld [vmem:[#allocation3 + $0x68c] ss:$16 sps:$4 sm:$0xff]  }
  0xbc   :  { %1793 = vmatpush1.bf16.msra.mxu0 %v3003_v42  ;;  %v3101_v42 = vld [vmem:[#allocation3 + $0x4ac] ss:$16 sps:$4 sm:$0xff]  }
  0xbd   :  { %1834 = vmatpush1.bf16.msra.mxu1 %v3006_v43  ;;  %1794 = vmatprep.subr.bf16.mxu0 %v3011_v44  ;;  %v3104_v43 = vld [vmem:[#allocation3 + $0x6ac] ss:$16 sps:$4 sm:$0xff]   ;;  %v3099_v44 = vld [vmem:[#allocation3 + $0x4a8] ss:$16 sps:$4 sm:$0xff]  }
  0xbe   :  { %1835 = vmatprep.subr.bf16.mxu1 %v3014_v45  ;;  %v3102_v45 = vld [vmem:[#allocation3 + $0x6a8] ss:$16 sps:$4 sm:$0xff]  }
  0xc0   :  { %1795 = vmatpush1.bf16.msra.mxu0 %v3009_v46  ;;  %v3107_v46 = vld [vmem:[#allocation3 + $0x4cc] ss:$16 sps:$4 sm:$0xff]  }
  0xc1   :  { %1836 = vmatpush1.bf16.msra.mxu1 %v3012_v47  ;;  %1796 = vmatprep.subr.bf16.mxu0 %v3017_v48  ;;  %v3110_v47 = vld [vmem:[#allocation3 + $0x6cc] ss:$16 sps:$4 sm:$0xff]   ;;  %v3105_v48 = vld [vmem:[#allocation3 + $0x4c8] ss:$16 sps:$4 sm:$0xff]  }
  0xc2   :  { %1837 = vmatprep.subr.bf16.mxu1 %v3020_v50  ;;  %v3108_v50 = vld [vmem:[#allocation3 + $0x6c8] ss:$16 sps:$4 sm:$0xff]  }
  0xc4   :  { %1797 = vmatpush1.bf16.msra.mxu0 %v3015_v51  ;;  %v3113_v51 = vld [vmem:[#allocation3 + $0x4ec] ss:$16 sps:$4 sm:$0xff]  }
  0xc5   :  { %1838 = vmatpush1.bf16.msra.mxu1 %v3018_v53  ;;  %1798 = vmatprep.subr.bf16.mxu0 %v3023_v54  ;;  %v3116_v53 = vld [vmem:[#allocation3 + $0x6ec] ss:$16 sps:$4 sm:$0xff]   ;;  %v3111_v54 = vld [vmem:[#allocation3 + $0x4e8] ss:$16 sps:$4 sm:$0xff]  }
  0xc6   :  { %1839 = vmatprep.subr.bf16.mxu1 %v3026_v55  ;;  %v3114_v55 = vld [vmem:[#allocation3 + $0x6e8] ss:$16 sps:$4 sm:$0xff]  }
  0xc8   :  { %1799 = vmatpush1.bf16.msra.mxu0 %v3021_v56  ;;  %v3119_v56 = vld [vmem:[#allocation3 + $0x50c] ss:$16 sps:$4 sm:$0xff]  }
  0xc9   :  { %1840 = vmatpush1.bf16.msra.mxu1 %v3024_v57  ;;  %1800 = vmatprep.subr.bf16.mxu0 %v3029_v58  ;;  %v3122_v57 = vld [vmem:[#allocation3 + $0x70c] ss:$16 sps:$4 sm:$0xff]   ;;  %v3117_v58 = vld [vmem:[#allocation3 + $0x508] ss:$16 sps:$4 sm:$0xff]  }
  0xca   :  { %1841 = vmatprep.subr.bf16.mxu1 %v3032_v59  ;;  %v3120_v59 = vld [vmem:[#allocation3 + $0x708] ss:$16 sps:$4 sm:$0xff]  }
  0xcc   :  { %1801 = vmatpush1.bf16.msra.mxu0 %v3027_v60  ;;  %v3125_v60 = vld [vmem:[#allocation3 + $0x52c] ss:$16 sps:$4 sm:$0xff]  }
  0xcd   :  { %1842 = vmatpush1.bf16.msra.mxu1 %v3030_v61  ;;  %1802 = vmatprep.subr.bf16.mxu0 %v3035_v62  ;;  %v3128_v61 = vld [vmem:[#allocation3 + $0x72c] ss:$16 sps:$4 sm:$0xff]   ;;  %v3123_v62 = vld [vmem:[#allocation3 + $0x528] ss:$16 sps:$4 sm:$0xff]  }
  0xce   :  { %1843 = vmatprep.subr.bf16.mxu1 %v3038_v63  ;;  %v3126_v63 = vld [vmem:[#allocation3 + $0x728] ss:$16 sps:$4 sm:$0xff]  }
  0xd0   :  { %1803 = vmatpush1.bf16.msra.mxu0 %v3033_v0  ;;  %v3131_v0 = vld [vmem:[#allocation3 + $0x54c] ss:$16 sps:$4 sm:$0xff]  }
  0xd1   :  { %1844 = vmatpush1.bf16.msra.mxu1 %v3036_v1  ;;  %1804 = vmatprep.subr.bf16.mxu0 %v3041_v2  ;;  %v3134_v1 = vld [vmem:[#allocation3 + $0x74c] ss:$16 sps:$4 sm:$0xff]   ;;  %v3129_v2 = vld [vmem:[#allocation3 + $0x548] ss:$16 sps:$4 sm:$0xff]  }
  0xd2   :  { %1845 = vmatprep.subr.bf16.mxu1 %v3044_v3  ;;  %v3132_v3 = vld [vmem:[#allocation3 + $0x748] ss:$16 sps:$4 sm:$0xff]  }
  0xd4   :  { %1805 = vmatpush1.bf16.msra.mxu0 %v3039_v4  ;;  %v3137_v4 = vld [vmem:[#allocation3 + $0x56c] ss:$16 sps:$4 sm:$0xff]  }
  0xd5   :  { %1846 = vmatpush1.bf16.msra.mxu1 %v3042_v5  ;;  %1806 = vmatprep.subr.bf16.mxu0 %v3047_v6  ;;  %v3140_v5 = vld [vmem:[#allocation3 + $0x76c] ss:$16 sps:$4 sm:$0xff]   ;;  %v3135_v6 = vld [vmem:[#allocation3 + $0x568] ss:$16 sps:$4 sm:$0xff]  }
  0xd6   :  { %1847 = vmatprep.subr.bf16.mxu1 %v3050_v7  ;;  %v3138_v7 = vld [vmem:[#allocation3 + $0x768] ss:$16 sps:$4 sm:$0xff]  }
  0xd8   :  { %1807 = vmatpush1.bf16.msra.mxu0 %v3045_v10  ;;  %v3143_v10 = vld [vmem:[#allocation3 + $0x58c] ss:$16 sps:$4 sm:$0xff]  }
  0xd9   :  { %1848 = vmatpush1.bf16.msra.mxu1 %v3048_v11  ;;  %1808 = vmatprep.subr.bf16.mxu0 %v3053_v12  ;;  %v3146_v11 = vld [vmem:[#allocation3 + $0x78c] ss:$16 sps:$4 sm:$0xff]   ;;  %v3141_v12 = vld [vmem:[#allocation3 + $0x588] ss:$16 sps:$4 sm:$0xff]  }
  0xda   :  { %1849 = vmatprep.subr.bf16.mxu1 %v3056_v13  ;;  %v3144_v13 = vld [vmem:[#allocation3 + $0x788] ss:$16 sps:$4 sm:$0xff]  }
  0xdc   :  { %1809 = vmatpush1.bf16.msra.mxu0 %v3051_v14  ;;  %v3149_v14 = vld [vmem:[#allocation3 + $0x5ac] ss:$16 sps:$4 sm:$0xff]  }
  0xdd   :  { %1850 = vmatpush1.bf16.msra.mxu1 %v3054_v15  ;;  %1810 = vmatprep.subr.bf16.mxu0 %v3059_v16  ;;  %v3152_v15 = vld [vmem:[#allocation3 + $0x7ac] ss:$16 sps:$4 sm:$0xff]   ;;  %v3147_v16 = vld [vmem:[#allocation3 + $0x5a8] ss:$16 sps:$4 sm:$0xff]  }
  0xde   :  { %1851 = vmatprep.subr.bf16.mxu1 %v3062_v17  ;;  %v3150_v17 = vld [vmem:[#allocation3 + $0x7a8] ss:$16 sps:$4 sm:$0xff]  }
  0xe0   :  { %1811 = vmatpush1.bf16.msra.mxu0 %v3057_v18  ;;  %v3155_v18 = vld [vmem:[#allocation3 + $0x5cc] ss:$16 sps:$4 sm:$0xff]  }
  0xe1   :  { %1852 = vmatpush1.bf16.msra.mxu1 %v3060_v19  ;;  %1812 = vmatprep.subr.bf16.mxu0 %v3065_v22  ;;  %v3158_v19 = vld [vmem:[#allocation3 + $0x7cc] ss:$16 sps:$4 sm:$0xff]   ;;  %v3153_v22 = vld [vmem:[#allocation3 + $0x5c8] ss:$16 sps:$4 sm:$0xff]  }
  0xe2   :  { %1853 = vmatprep.subr.bf16.mxu1 %v3068_v23  ;;  %v3156_v23 = vld [vmem:[#allocation3 + $0x7c8] ss:$16 sps:$4 sm:$0xff]  }
  0xe4   :  { %1813 = vmatpush1.bf16.msra.mxu0 %v3063_v24  ;;  %v3161_v24 = vld [vmem:[#allocation3 + $0x5ec] ss:$16 sps:$4 sm:$0xff]  }
  0xe5   :  { %1854 = vmatpush1.bf16.msra.mxu1 %v3066_v25  ;;  %1864 = vmatprep.subr.bf16.mxu0 %v3071_v26  ;;  %v3164_v25 = vld [vmem:[#allocation3 + $0x7ec] ss:$16 sps:$4 sm:$0xff]   ;;  %v2007_v26 = vld [vmem:[#allocation5 + $0x80] sm:$0xff] }
  0xe6   :  { %1905 = vmatprep.subr.bf16.mxu1 %v3074_v27  ;;  %v2008_v27 = vld [vmem:[#allocation5 + $0x88] sm:$0xff] }
  0xe7   :  { %1815 = vmatmul.mubr.bf16.vlgmr.msra.gmra.mrb[8].mxu0 %v3304_v8  ;;  %v3089_v8 = vld [vmem:[#allocation3 + $0x46c] ss:$16 sps:$4 sm:$0xff]  }
  0xe8   :  { %1856 = vmatmul.mubr.bf16.vlgmr.msra.gmra.mrb[8].mxu1 %v3306_v9  ;;  %1865 = vmatpush1.bf16.msra.mxu0 %v3069_v28  ;;  %v3092_v9 = vld [vmem:[#allocation3 + $0x66c] ss:$16 sps:$4 sm:$0xff]   ;;  %v3159_v28 = vld [vmem:[#allocation3 + $0x5e8] ss:$16 sps:$4 sm:$0xff]  }
  0xe9   :  { %1906 = vmatpush1.bf16.msra.mxu1 %v3072_v29  ;;  %1866 = vmatprep.subr.bf16.mxu0 %v3077_v30  ;;  %v3162_v29 = vld [vmem:[#allocation3 + $0x7e8] ss:$16 sps:$4 sm:$0xff]   ;;  %v2684_v30 = vpack.c.bf16 %v2008_v27, %v2007_v26  ;;  %v2041_v26 = vld [vmem:[#allocation5 + $0x190] sm:$0xff] }
  0xea   :  { %1907 = vmatprep.subr.bf16.mxu1 %v3080_v31  ;;  %1896 = vmatprep.mubr.bf16.mxu0 %v3313_v37  ;;  %v3093_v37 = vld [vmem:[#allocation3 + $0x488] ss:$16 sps:$4 sm:$0xff]   ;;  %v1991_v31 = vld [vmem:[#allocation5] sm:$0xff] }
  0xeb   :  { %1937 = vmatprep.mubr.bf16.mxu1 %v3318_v40  ;;  %v3096_v40 = vld [vmem:[#allocation3 + $0x688] ss:$16 sps:$4 sm:$0xff]  }
  0xec   :  { %1867 = vmatpush1.bf16.msra.mxu0 %v3075_v32  ;;  %v1992_v32 = vld [vmem:[#allocation5 + $0x8] sm:$0xff]  ;;  %v2042_v27 = vld [vmem:[#allocation5 + $0x198] sm:$0xff] }
  0xed   :  { %1908 = vmatpush1.bf16.msra.mxu1 %v3078_v33  ;;  %1868 = vmatprep.subr.bf16.mxu0 %v3083_v34  ;;  %v2009_v33 = vld [vmem:[#allocation5 + $0x90] sm:$0xff]  ;;  %v2010_v34 = vld [vmem:[#allocation5 + $0x98] sm:$0xff] }
  0xee   :  { %1909 = vmatprep.subr.bf16.mxu1 %v3086_v35  ;;  %v2686_v35 = vpack.c.bf16 %v1992_v32, %v1991_v31  ;;  %v2026_v31 = vld [vmem:[#allocation5 + $0x118] sm:$0xff]  ;;  %v2043_v32 = vld [vmem:[#allocation5 + $0x1a0] sm:$0xff] }
  0xf0   :  { %1869 = vmatpush1.bf16.msra.mxu0 %v3081_v36  ;;  %v2688_v36 = vpack.c.bf16 %v2010_v34, %v2009_v33  ;;  %v2044_v34 = vld [vmem:[#allocation5 + $0x1a8] sm:$0xff] }
  0xf1   :  { %1910 = vmatpush1.bf16.msra.mxu1 %v3084_v38  ;;  %1870 = vmatprep.subr.bf16.mxu0 %v3089_v8  ;;  %v1993_v38 = vld [vmem:[#allocation5 + $0x10] sm:$0xff]  ;;  %v1994_v8 = vld [vmem:[#allocation5 + $0x18] sm:$0xff] }
  0xf2   :  { %1911 = vmatprep.subr.bf16.mxu1 %v3092_v9  ;;  %v2011_v9 = vld [vmem:[#allocation5 + $0xa0] sm:$0xff] }
  0xf4   :  { %1871 = vmatpush1.bf16.msra.mxu0 %v3087_v39  ;;  %v2012_v39 = vld [vmem:[#allocation5 + $0xa8] sm:$0xff] }
  0xf5   :  { %1912 = vmatpush1.bf16.msra.mxu1 %v3090_v49  ;;  %1872 = vmatprep.subr.bf16.mxu0 %v3095_v52  ;;  %v2690_v49 = vpack.c.bf16 %v1994_v8, %v1993_v38  ;;  %v2692_v52 = vpack.c.bf16 %v2012_v39, %v2011_v9  ;;  %v2027_v38 = vld [vmem:[#allocation5 + $0x120] sm:$0xff]  ;;  %v2028_v8 = vld [vmem:[#allocation5 + $0x128] sm:$0xff]  ;;  %v2045_v9 = vld [vmem:[#allocation5 + $0x1b0] sm:$0xff] }
  0xf6   :  { %1913 = vmatprep.subr.bf16.mxu1 %v3098_v41  ;;  %v1995_v41 = vld [vmem:[#allocation5 + $0x20] sm:$0xff]  ;;  %v2046_v39 = vld [vmem:[#allocation5 + $0x1b8] sm:$0xff] }
  0xf8   :  { %1873 = vmatpush1.bf16.msra.mxu0 %v3093_v37  ;;  %v1996_v37 = vld [vmem:[#allocation5 + $0x28] sm:$0xff] }
  0xf9   :  { %1914 = vmatpush1.bf16.msra.mxu1 %v3096_v40  ;;  %1874 = vmatprep.subr.bf16.mxu0 %v3101_v42  ;;  %v2013_v40 = vld [vmem:[#allocation5 + $0xb0] sm:$0xff]  ;;  %v2014_v42 = vld [vmem:[#allocation5 + $0xb8] sm:$0xff] }
  0xfa   :  { %1915 = vmatprep.subr.bf16.mxu1 %v3104_v43  ;;  %v2694_v43 = vpack.c.bf16 %v1996_v37, %v1995_v41  ;;  %v2029_v41 = vld [vmem:[#allocation5 + $0x130] sm:$0xff]  ;;  %v2030_v37 = vld [vmem:[#allocation5 + $0x138] sm:$0xff] }
  0xfc   :  { %1875 = vmatpush1.bf16.msra.mxu0 %v3099_v44  ;;  %v2696_v44 = vpack.c.bf16 %v2014_v42, %v2013_v40  ;;  %v2047_v40 = vld [vmem:[#allocation5 + $0x1c0] sm:$0xff]  ;;  %v2048_v42 = vld [vmem:[#allocation5 + $0x1c8] sm:$0xff] }
  0xfd   :  { %1916 = vmatpush1.bf16.msra.mxu1 %v3102_v45  ;;  %1876 = vmatprep.subr.bf16.mxu0 %v3107_v46  ;;  %v1997_v45 = vld [vmem:[#allocation5 + $0x30] sm:$0xff]  ;;  %v1998_v46 = vld [vmem:[#allocation5 + $0x38] sm:$0xff] }
  0xfe   :  { %1917 = vmatprep.subr.bf16.mxu1 %v3110_v47  ;;  %v2015_v47 = vld [vmem:[#allocation5 + $0xc0] sm:$0xff] }
 0x100   :  { %1877 = vmatpush1.bf16.msra.mxu0 %v3105_v48  ;;  %v2016_v48 = vld [vmem:[#allocation5 + $0xc8] sm:$0xff] }
 0x101   :  { %1918 = vmatpush1.bf16.msra.mxu1 %v3108_v50  ;;  %1878 = vmatprep.subr.bf16.mxu0 %v3113_v51  ;;  %v1999_v50 = vld [vmem:[#allocation5 + $0x40] sm:$0xff]  ;;  %v2000_v51 = vld [vmem:[#allocation5 + $0x48] sm:$0xff] }
 0x102   :  { %1919 = vmatprep.subr.bf16.mxu1 %v3116_v53  ;;  %v2017_v53 = vld [vmem:[#allocation5 + $0xd0] sm:$0xff] }
 0x104   :  { %1879 = vmatpush1.bf16.msra.mxu0 %v3111_v54  ;;  %v2018_v54 = vld [vmem:[#allocation5 + $0xd8] sm:$0xff] }
 0x105   :  { %1920 = vmatpush1.bf16.msra.mxu1 %v3114_v55  ;;  %1880 = vmatprep.subr.bf16.mxu0 %v3119_v56  ;;  %v2702_v55 = vpack.c.bf16 %v2000_v51, %v1999_v50  ;;  %v2704_v56 = vpack.c.bf16 %v2018_v54, %v2017_v53  ;;  %v1963_v50 = vlaneseq  ;;  %v2033_v54 = vld [vmem:[#allocation5 + $0x150] sm:$0xff] }
 0x106   :  { %1921 = vmatprep.subr.bf16.mxu1 %v3122_v57  ;;  %v2001_v57 = vld [vmem:[#allocation5 + $0x50] sm:$0xff] }
 0x107   :  { %v3346_v51 = vshrl.u32 %v1963_v50, 7  ;;  %v2213_v50 = vld [vmem:[%s3425_s5 + $0x50] sm:$0xff] }
 0x108   :  { %1881 = vmatpush1.bf16.msra.mxu0 %v3117_v58  ;;  %v2002_v58 = vld [vmem:[#allocation5 + $0x58] sm:$0xff] }
 0x109   :  { %1922 = vmatpush1.bf16.msra.mxu1 %v3120_v59  ;;  %1882 = vmatprep.subr.bf16.mxu0 %v3125_v60  ;;  %v2019_v59 = vld [vmem:[#allocation5 + $0xe0] sm:$0xff]  ;;  %v2020_v60 = vld [vmem:[#allocation5 + $0xe8] sm:$0xff]  ;;  %v1965_v53 = vsub.s32 0, %v3346_v51 }
 0x10a   :  { %1923 = vmatprep.subr.bf16.mxu1 %v3128_v61  ;;  %v2706_v61 = vpack.c.bf16 %v2002_v58, %v2001_v57  ;;  %v1969_v57 = vsub.s32 1, %v3346_v51 }
 0x10c   :  { %1883 = vmatpush1.bf16.msra.mxu0 %v3123_v62  ;;  %v2708_v62 = vpack.c.bf16 %v2020_v60, %v2019_v59 }
 0x10d   :  { %1924 = vmatpush1.bf16.msra.mxu1 %v3126_v63  ;;  %1884 = vmatprep.subr.bf16.mxu0 %v3131_v0  ;;  %v2003_v63 = vld [vmem:[#allocation5 + $0x60] sm:$0xff]  ;;  %v2004_v0 = vld [vmem:[#allocation5 + $0x68] sm:$0xff] }
 0x10e   :  { %1925 = vmatprep.subr.bf16.mxu1 %v3134_v1 }
 0x110   :  { %1885 = vmatpush1.bf16.msra.mxu0 %v3129_v2 }
 0x111   :  { %1926 = vmatpush1.bf16.msra.mxu1 %v3132_v3  ;;  %1886 = vmatprep.subr.bf16.mxu0 %v3137_v4  ;;  %v2021_v3 = vld [vmem:[#allocation5 + $0xf0] sm:$0xff]  ;;  %v2022_v4 = vld [vmem:[#allocation5 + $0xf8] sm:$0xff] }
 0x112   :  { %1927 = vmatprep.subr.bf16.mxu1 %v3140_v5 }
 0x114   :  { %1887 = vmatpush1.bf16.msra.mxu0 %v3135_v6 }
 0x115   :  { %1928 = vmatpush1.bf16.msra.mxu1 %v3138_v7  ;;  %1888 = vmatprep.subr.bf16.mxu0 %v3143_v10 }
 0x116   :  { %1929 = vmatprep.subr.bf16.mxu1 %v3146_v11 }
 0x118   :  { %1889 = vmatpush1.bf16.msra.mxu0 %v3141_v12 }
 0x119   :  { %1930 = vmatpush1.bf16.msra.mxu1 %v3144_v13  ;;  %1890 = vmatprep.subr.bf16.mxu0 %v3149_v14  ;;  %v2710_v13 = vpack.c.bf16 %v2004_v0, %v2003_v63  ;;  %v2005_v14 = vld [vmem:[#allocation5 + $0x70] sm:$0xff] }
 0x11a   :  { %1931 = vmatprep.subr.bf16.mxu1 %v3152_v15  ;;  %v2006_v15 = vld [vmem:[#allocation5 + $0x78] sm:$0xff] }
 0x11b   :  { %v2714_v33 = vpack.c.bf16 %v2006_v15, %v2005_v14 }
 0x11c   :  { %1891 = vmatpush1.bf16.msra.mxu0 %v3147_v16 }
 0x11d   :  { %1932 = vmatpush1.bf16.msra.mxu1 %v3150_v17  ;;  %1892 = vmatprep.subr.bf16.mxu0 %v3155_v18  ;;  %v2712_v18 = vpack.c.bf16 %v2022_v4, %v2021_v3  ;;  %v2035_v4 = vld [vmem:[#allocation5 + $0x160] sm:$0xff] }
 0x11e   :  { %1933 = vmatprep.subr.bf16.mxu1 %v3158_v19  ;;  %v2039_v19 = vld [vmem:[#allocation5 + $0x180] sm:$0xff] }
 0x120   :  { %1893 = vmatpush1.bf16.msra.mxu0 %v3153_v22  ;;  %v2040_v22 = vld [vmem:[#allocation5 + $0x188] sm:$0xff] }
 0x121   :  { %1934 = vmatpush1.bf16.msra.mxu1 %v3156_v23  ;;  %1894 = vmatprep.subr.bf16.mxu0 %v3161_v24  ;;  %v2023_v23 = vld [vmem:[#allocation5 + $0x100] sm:$0xff]  ;;  %v2716_v24 = vpack.c.bf16 %v2040_v22, %v2039_v19  ;;  %v2054_v19 = vld [vmem:[#allocation5 + $0x1f8] sm:$0xff] }
 0x122   :  { %1935 = vmatprep.subr.bf16.mxu1 %v3164_v25  ;;  %v2024_v25 = vld [vmem:[#allocation5 + $0x108] sm:$0xff] }
 0x124   :  { %1895 = vmatpush1.bf16.msra.mxu0 %v3159_v28  ;;  %v2718_v28 = vpack.c.bf16 %v2024_v25, %v2023_v23  ;;  %v2038_v25 = vld [vmem:[#allocation5 + $0x178] sm:$0xff] }
 0x125   :  { %1936 = vmatpush1.bf16.msra.mxu1 %v3162_v29  ;;  %2685 = vmatprep.subr.bf16.mxu0 %v2684_v30  ;;  %v2720_v29 = vpack.c.bf16 %v2042_v27, %v2041_v26  ;;  %v2025_v30 = vld [vmem:[#allocation5 + $0x110] sm:$0xff] }
 0x126   :  { %2717 = vmatprep.subr.bf16.mxu1 %v2716_v24  ;;  %v2037_v24 = vld [vmem:[#allocation5 + $0x170] sm:$0xff] }
 0x127   :  { %1897 = vmatmul.mubr.bf16.vlgmr.msra.gmra.mrb[12].mxu0 %v3328_v20  ;;  %v2698_v20 = vpack.c.bf16 %v1998_v46, %v1997_v45  ;;  %v2031_v45 = vld [vmem:[#allocation5 + $0x140] sm:$0xff]  ;;  %v2032_v46 = vld [vmem:[#allocation5 + $0x148] sm:$0xff]  ;;  %v2746_v27 = vpack.c.bf16 %v2038_v25, %v2037_v24  ;;  %v3221_v24 = vmov 0.0  }
 0x128   :  { %1938 = vmatmul.mubr.bf16.vlgmr.msra.gmra.mrb[12].mxu1 %v3330_v21  ;;  %2687 = vmatpush3.bf16.msra.mxu0 %v2686_v35  ;;  %v2700_v21 = vpack.c.bf16 %v2016_v48, %v2015_v47  ;;  %v2722_v35 = vpack.c.bf16 %v2026_v31, %v2025_v30  ;;  %v2049_v47 = vld [vmem:[#allocation5 + $0x1d0] sm:$0xff]  ;;  %v2050_v48 = vld [vmem:[#allocation5 + $0x1d8] sm:$0xff]  ;;  %v2560_v25 = vld [vmem:[%s3424_s4] ss:$0 sm:$0xff] }
 0x129   :  { %2689 = vmatprep.subr.bf16.mxu0 %v2688_v36  ;;  %2719 = vmatpush3.bf16.msra.mxu1 %v2718_v28  ;;  %v2724_v36 = vpack.c.bf16 %v2044_v34, %v2043_v32 }
 0x12a   :  { %2721 = vmatprep.subr.bf16.mxu1 %v2720_v29 }
 0x12c   :  { %2691 = vmatpush3.bf16.msra.mxu0 %v2690_v49  ;;  %v2726_v49 = vpack.c.bf16 %v2028_v8, %v2027_v38 }
 0x12d   :  { %2693 = vmatprep.subr.bf16.mxu0 %v2692_v52  ;;  %2723 = vmatpush3.bf16.msra.mxu1 %v2722_v35  ;;  %v2728_v52 = vpack.c.bf16 %v2046_v39, %v2045_v9  ;;  %v2203_v9 = vld [vmem:[%s3425_s5] sm:$0xff]  ;;  %v2204_v39 = vld [vmem:[%s3425_s5 + $0x8] sm:$0xff] }
 0x12e   :  { %2725 = vmatprep.subr.bf16.mxu1 %v2724_v36 }
 0x130   :  { %2695 = vmatpush3.bf16.msra.mxu0 %v2694_v43  ;;  %v2730_v43 = vpack.c.bf16 %v2030_v37, %v2029_v41  ;;  %v2749_v41 = vpack.c.bf16 %v2204_v39, %v2203_v9  ;;  %v2206_v37 = vld [vmem:[%s3425_s5 + $0x18] sm:$0xff] }
 0x131   :  { %2697 = vmatprep.subr.bf16.mxu0 %v2696_v44  ;;  %2727 = vmatpush3.bf16.msra.mxu1 %v2726_v49  ;;  %v2732_v44 = vpack.c.bf16 %v2048_v42, %v2047_v40  ;;  %v2205_v49 = vld [vmem:[%s3425_s5 + $0x10] sm:$0xff]  ;;  %v2207_v42 = vld [vmem:[%s3425_s5 + $0x20] sm:$0xff] }
 0x132   :  { %2729 = vmatprep.subr.bf16.mxu1 %v2728_v52  ;;  %v3219_v52 = vmov 0.0|0.0   ;;  %v2752_v40 = vpack.c.bf16 %v2206_v37, %v2205_v49 }
 0x134   :  { %2699 = vmatpush3.bf16.msra.mxu0 %v2698_v20  ;;  %v2734_v20 = vpack.c.bf16 %v2032_v46, %v2031_v45  ;;  %v2209_v45 = vld [vmem:[%s3425_s5 + $0x30] sm:$0xff]  ;;  %v2210_v46 = vld [vmem:[%s3425_s5 + $0x38] sm:$0xff] }
 0x135   :  { %2701 = vmatprep.subr.bf16.mxu0 %v2700_v21  ;;  %2731 = vmatpush3.bf16.msra.mxu1 %v2730_v43  ;;  %v2736_v21 = vpack.c.bf16 %v2050_v48, %v2049_v47  ;;  %v2208_v43 = vld [vmem:[%s3425_s5 + $0x28] sm:$0xff]  ;;  %v2758_v47 = vpack.c.bf16 %v2210_v46, %v2209_v45  ;;  %v2211_v48 = vld [vmem:[%s3425_s5 + $0x40] sm:$0xff] }
 0x136   :  { %2733 = vmatprep.subr.bf16.mxu1 %v2732_v44  ;;  %v2755_v44 = vpack.c.bf16 %v2208_v43, %v2207_v42 }
 0x138   :  { %2703 = vmatpush3.bf16.msra.mxu0 %v2702_v55  ;;  %v2034_v55 = vld [vmem:[#allocation5 + $0x158] sm:$0xff] }
 0x139   :  { %2705 = vmatprep.subr.bf16.mxu0 %v2704_v56  ;;  %2735 = vmatpush3.bf16.msra.mxu1 %v2734_v20  ;;  %v3352_v56 = vld [vmem:[%s3422_s2] sm:$0xf]  ;;  %v2738_v58 = vpack.c.bf16 %v2034_v55, %v2033_v54  ;;  %v2212_v20 = vld [vmem:[%s3425_s5 + $0x48] sm:$0xff]  ;;  %v1973_v55 = vsub.s32 2, %v3346_v51 }
 0x13a   :  { %v1652_v1 = vpop.f32.mrb[0].mxu0  ;;  %2737 = vmatprep.subr.bf16.mxu1 %v2736_v21  ;;  %v1966_v0 = vrot.slane %v3352_v56, %v1965_v53  ;;  %v2761_v21 = vpack.c.bf16 %v2212_v20, %v2211_v48  ;;  %v2214_v53 = vld [vmem:[%s3425_s5 + $0x58] sm:$0xff] }
 0x13b   :  { %v1693_v2 = vpop.f32.mrb[0].mxu1  ;;  %v1654_v6 = vpop.f32.mrb[1].mxu0  ;;  %v2764_v54 = vpack.c.bf16 %v2214_v53, %v2213_v50 }
 0x13c   :  { %v3342_v5 = vadd.f32 %v1693_v2, %v1652_v1  ;;  %v1695_v7 = vpop.f32.mrb[1].mxu1  ;;  %v1656_v11 = vpop.f32.mrb[2].mxu0  ;;  %2707 = vmatpush3.bf16.msra.mxu0 %v2706_v61  ;;  %v2051_v61 = vld [vmem:[#allocation5 + $0x1e0] sm:$0xff] }
 0x13d   :  { %v3344_v10 = vadd.f32 %v1695_v7, %v1654_v6  ;;  %v1697_v12 = vpop.f32.mrb[2].mxu1  ;;  %v1657_v16 = vpop.f32.mrb[3].mxu0  ;;  %2709 = vmatprep.subr.bf16.mxu0 %v2708_v62  ;;  %2739 = vmatpush3.bf16.msra.mxu1 %v2738_v58  ;;  %v2052_v62 = vld [vmem:[#allocation5 + $0x1e8] sm:$0xff]  ;;  %v1970_v11 = vrot.slane %v3352_v56, %v1969_v57  ;;  %v1977_v57 = vsub.s32 3, %v3346_v51 }
 0x13e   :  { %v1698_v17 = vpop.f32.mrb[3].mxu1  ;;  %v2740_v3 = vpack.c.bf16 %v2052_v62, %v2051_v61  ;;  %v2036_v6 = vld [vmem:[#allocation5 + $0x168] sm:$0xff]  ;;  %v1974_v61 = vrot.slane %v3352_v56, %v1973_v55 }
 0x13f   :  { %v2742_v14 = vpack.c.bf16 %v2036_v6, %v2035_v4 }
 0x140   :  { %2711 = vmatpush3.bf16.msra.mxu0 %v2710_v13  ;;  %2741 = vmatprep.subr.bf16.mxu1 %v2740_v3 }
 0x141   :  { %2713 = vmatprep.subr.bf16.mxu0 %v2712_v18  ;;  %2743 = vmatpush3.bf16.msra.mxu1 %v2742_v14 }
 0x144   :  { %2715 = vmatpush3.bf16.msra.mxu0 %v2714_v33 }
 0x145   :  { %2748 = vmatprep.subr.bf16.mxu0 %v3219_v52 }
 0x17a   :  { %v1734_v59 = vpop.f32.mrb[4].mxu0 }
 0x17b   :  { %v1775_v60 = vpop.f32.mrb[4].mxu1  ;;  %v1735_v63 = vadd.f32 %v1734_v59, %v3342_v5  ;;  %v1736_v1 = vpop.f32.mrb[5].mxu0  ;;  %v2053_v5 = vld [vmem:[#allocation5 + $0x1f0] sm:$0xff] }
 0x17c   :  { %v1777_v2 = vpop.f32.mrb[5].mxu1  ;;  %v1737_v7 = vadd.f32 %v1736_v1, %v3344_v10  ;;  %v1738_v12 = vpop.f32.mrb[6].mxu0  ;;  %v2744_v23 = vpack.c.bf16 %v2054_v19, %v2053_v5  ;;  %v1978_v1 = vrot.slane %v3352_v56, %v1977_v57  ;;  %v2216_v56 = vld [vmem:[%s3425_s5 + $0x68] sm:$0xff]  ;;  %v2217_v19 = vld [vmem:[%s3425_s5 + $0x70] sm:$0xff] }
 0x17d   :  { %v1779_v13 = vpop.f32.mrb[6].mxu1  ;;  %v1776_v15 = vadd.f32 %v1775_v60, %v1735_v63  ;;  %v1739_v16 = vpop.f32.mrb[7].mxu0 }
 0x17e   :  { %v1780_v17 = vpop.f32.mrb[7].mxu1  ;;  %v1778_v18 = vadd.f32 %v1777_v2, %v1737_v7  ;;  %2745 = vmatprep.subr.bf16.mxu1 %v2744_v23 }
 0x17f   :  { %v1983_v22 = vadd.f32 %v1966_v0, %v1776_v15  ;;  %2747 = vmatpush3.bf16.msra.mxu1 %v2746_v27  ;;  %v2215_v15 = vld [vmem:[%s3425_s5 + $0x60] sm:$0xff] }
 0x180   :  { %v1984_v26 = vadd.f32 %v1970_v11, %v1778_v18  ;;  %v2767_v16 = vpack.c.bf16 %v2216_v56, %v2215_v15 }
 0x181   :  { %v1987_v28 = vmax.f32 %v1983_v22, 0.0  ;;  %v2218_v22 = vld [vmem:[%s3425_s5 + $0x78] sm:$0xff] }
 0x182   :  { %v1988_v10 = vmax.f32 %v1984_v26, 0.0  ;;  %v2770_v23 = vpack.c.bf16 %v2218_v22, %v2217_v19 }
 0x184   :  { %2126 = vmatprep.mubr.f32.mxu0 %v1988_v10 }
 0x185   :  { %2127 = vmatmul.mubr.f32.vlgmr.msra.gmra.mrb[16].mxu0 %v1987_v28 }
 0x186   :  { %2750 = vmatpush3.bf16.msra.mxu0 %v2749_v41  ;;  %2681 = vmatprep.mubr.msk.f32.mxu0 %vm3220_vm0, %v3221_v24 }
 0x187   :  { %2751 = vmatprep.subr.bf16.mxu0 %v3219_v52 }
 0x18a   :  { %2753 = vmatpush3.bf16.msra.mxu0 %v2752_v40 }
 0x18b   :  { %2754 = vmatprep.subr.bf16.mxu0 %v3219_v52 }
 0x18e   :  { %2756 = vmatpush3.bf16.msra.mxu0 %v2755_v44 }
 0x18f   :  { %2757 = vmatprep.subr.bf16.mxu0 %v3219_v52 }
 0x192   :  { %2759 = vmatpush3.bf16.msra.mxu0 %v2758_v47 }
 0x193   :  { %2760 = vmatprep.subr.bf16.mxu0 %v3219_v52 }
 0x196   :  { %2762 = vmatpush3.bf16.msra.mxu0 %v2761_v21 }
 0x197   :  { %2763 = vmatprep.subr.bf16.mxu0 %v3219_v52 }
 0x19a   :  { %2765 = vmatpush3.bf16.msra.mxu0 %v2764_v54 }
 0x19b   :  { %2766 = vmatprep.subr.bf16.mxu0 %v3219_v52 }
 0x19e   :  { %2768 = vmatpush3.bf16.msra.mxu0 %v2767_v16 }
 0x19f   :  { %2769 = vmatprep.subr.bf16.mxu0 %v3219_v52 }
 0x1a2   :  { %2771 = vmatpush3.bf16.msra.mxu0 %v2770_v23 }
 0x1ba   :  { %v1816_v29 = vpop.f32.mrb[8].mxu0 }
 0x1bb   :  { %v1857_v30 = vpop.f32.mrb[8].mxu1  ;;  %v1818_v32 = vpop.f32.mrb[9].mxu0 }
 0x1bc   :  { %v1858_v31 = vadd.f32 %v1857_v30, %v1816_v29  ;;  %v1859_v33 = vpop.f32.mrb[9].mxu1  ;;  %v1820_v35 = vpop.f32.mrb[10].mxu0 }
 0x1bd   :  { %v1860_v34 = vadd.f32 %v1859_v33, %v1818_v32  ;;  %v1861_v36 = vpop.f32.mrb[10].mxu1  ;;  %v1821_v38 = vpop.f32.mrb[11].mxu0 }
 0x1be   :  { %v1862_v8 = vpop.f32.mrb[11].mxu1 }
 0x1fa   :  { %v1898_v58 = vpop.f32.mrb[12].mxu0 }
 0x1fb   :  { %v1939_v59 = vpop.f32.mrb[12].mxu1  ;;  %v1899_v60 = vadd.f32 %v1898_v58, %v1858_v31  ;;  %v1900_v62 = vpop.f32.mrb[13].mxu0  ;;  %v2561_v31 = vld [vmem:[%s3426_s6] ss:$0 sm:$0xff] }
 0x1fc   :  { %v1941_v63 = vpop.f32.mrb[13].mxu1  ;;  %v1901_v0 = vadd.f32 %v1900_v62, %v1860_v34  ;;  %v1902_v2 = vpop.f32.mrb[14].mxu0 }
 0x1fd   :  { %v1943_v3 = vpop.f32.mrb[14].mxu1  ;;  %v1940_v4 = vadd.f32 %v1939_v59, %v1899_v60  ;;  %v1903_v6 = vpop.f32.mrb[15].mxu0 }
 0x1fe   :  { %v1944_v7 = vpop.f32.mrb[15].mxu1  ;;  %v1942_v11 = vadd.f32 %v1941_v63, %v1901_v0 }
 0x1ff   :  { %v1985_v12 = vadd.f32 %v1974_v61, %v1940_v4 }
 0x200   :  { %v1986_v13 = vadd.f32 %v1978_v1, %v1942_v11 }
 0x201   :  { %v1989_v51 = vmax.f32 %v1985_v12, 0.0 }
 0x202   :  { %v1990_v14 = vmax.f32 %v1986_v13, 0.0 }
 0x204   :  { %2196 = vmatprep.mubr.f32.mxu1 %v1990_v14 }
 0x205   :  { %2197 = vmatmul.mubr.f32.vlgmr.msra.gmra.mrb[16].mxu1 %v1989_v51 }
 0x258   :  { %v2594_v17 = vpop.f32.mrb[16].mxu0 }
 0x259   :  { %v2595_v18 = vpop.f32.mrb[17].mxu0 }
 0x25a   :  { %v2596_v5 = vadd.f32 %v2595_v18, %v2594_v17 }
 0x25c   :  { %v2129_v10 = vadd.f32 %v2596_v5, %v2560_v25 }
 0x2d8   :  { %v2629_v26 = vpop.f32.mrb[16].mxu1 }
 0x2d9   :  { %v2630_v27 = vpop.f32.mrb[17].mxu1 }
 0x2da   :  { %v2631_v28 = vadd.f32 %v2630_v27, %v2629_v26 }
 0x2dc   :  { %v2199_v29 = vadd.f32 %v2631_v28, %v2129_v10 }
 0x2de   :  { %v2202_v30 = vmax.f32 %v2199_v29, 0.0 }
 0x2e0   :  { %2682 = vmatmul.mubr.f32.vlgmr.msra.gmra.mrb[18].mxu0 %v2202_v30 }
 0x3b3   :  { %v2292_v32 = vpop.f32.mrb[18].mxu0 }
 0x3b4   :  { %v2293_v33 = vadd.f32 %v2561_v31, %v2292_v32  ;;  %v2683_v34 = vpop.f32.mrb[19].mxu0 }
 0x3b6   :  { %2297 = vst.msk [vmem:[%s3427_s7] sm:$0xff] %vm2296_vm1, %v2293_v33 }
 0x3b7   :  { %2302 = vsyncpa [#allocation4], 1 }
 0x3b8   :  { %2303 = vsyncpa [#allocation6], 1 }

</bundles_post_ra>
